<compile_context>
chip_gen: v5e
topology: v5e:2x2
jax: 0.10.0
libtpu: 0.0.40
codegen_flags: <defaults>
</compile_context>

<pallas_src>
import jax
import jax.numpy as jnp
from jax.experimental import pallas as pl
from jax.experimental.pallas import tpu as pltpu


def relu_conv1x1_kernel(x_ref, w_ref, o_ref):
    # x_ref: (TK, M)      K-slice of the input (M = H*W), batch dim squeezed
    # w_ref: (C_out, TK)  K-slice of the 1x1 conv weight
    # o_ref: (C_out, M)   f32 output block, resident across the K grid axis
    k = pl.program_id(1)

    @pl.when(k == 0)
    def _init():
        o_ref[...] = jnp.zeros_like(o_ref)

    x = jnp.maximum(x_ref[...], jnp.zeros((), x_ref.dtype))  # fused ReLU
    # TODO(synk): on v6e/v7x, casting x/w to bf16 here (keeping the f32
    # accumulation via preferred_element_type) would halve HBM traffic at
    # slightly reduced precision; kept f32 to match PyTorch numerics.
    o_ref[...] += jnp.dot(w_ref[...], x, preferred_element_type=jnp.float32)


def relu_conv1x1(x_nchw: jax.Array, weight_oihw: jax.Array, k_block: int = 256):
    """ReLU followed by 1x1 conv, stride 1, no bias. NCHW in, NCHW out."""
    N, C_in, H, W = x_nchw.shape
    C_out = weight_oihw.shape[0]
    M = H * W

    # Free, contiguous reshapes — no transposes anywhere.
    x_mat = x_nchw.reshape(N, C_in, M)           # (N, C_in, H*W)
    w_mat = weight_oihw.reshape(C_out, C_in)     # (C_out, C_in)

    if C_in % k_block != 0:
        k_block = C_in
    n_k = C_in // k_block

    itemsize = jnp.dtype(x_nchw.dtype).itemsize
    flops = 2 * N * C_out * C_in * M
    bytes_accessed = (N * C_in * M + C_out * C_in + N * C_out * M) * itemsize

    out = pl.pallas_call(
        relu_conv1x1_kernel,
        out_shape=jax.ShapeDtypeStruct((N, C_out, M), jnp.float32),
        grid=(N, n_k),
        in_specs=[
            # batch dim squeezed out of the kernel ref; K-slice of activations
            pl.BlockSpec((None, k_block, M), lambda n, k: (n, k, 0)),
            # K-slice of the weight (full C_out rows)
            pl.BlockSpec((C_out, k_block), lambda n, k: (0, k)),
        ],
        # output block index constant along k -> stays resident (accumulator)
        out_specs=pl.BlockSpec((None, C_out, M), lambda n, k: (n, 0, 0)),
        compiler_params=pltpu.CompilerParams(
            dimension_semantics=("parallel", "arbitrary"),
        ),
        cost_estimate=pl.CostEstimate(
            flops=flops, transcendentals=0, bytes_accessed=bytes_accessed
        ),
    )(x_mat, w_mat)

    return out.reshape(N, C_out, H, W)


relu_conv1x1_jit = jax.jit(relu_conv1x1)


if __name__ == "__main__":
    key = jax.random.PRNGKey(0)
    kx, kw = jax.random.split(key)

    # Shapes implied by the module: input [1, 1024, 14, 14], conv 1024 -> 256.
    N, C_in, H, W = 1, 1024, 14, 14
    C_out = 256

    x = jax.random.normal(kx, (N, C_in, H, W), dtype=jnp.float32)
    # Deterministic weight init (kaiming-uniform-ish scale for a 1x1 conv)
    bound = 1.0 / (C_in ** 0.5)
    weight = jax.random.uniform(
        kw, (C_out, C_in, 1, 1), minval=-bound, maxval=bound, dtype=jnp.float32
    )

    out = relu_conv1x1_jit(x, weight)
    out = jax.block_until_ready(out)

    # Sanity check against a plain-JAX reference (f32, highest precision).
    ref = jax.lax.conv_general_dilated(
        jnp.maximum(x, 0.0),
        weight,
        window_strides=(1, 1),
        padding="VALID",
        dimension_numbers=("NCHW", "OIHW", "NCHW"),
        precision=jax.lax.Precision.HIGHEST,
    )
    assert out.shape == (N, C_out, H, W), out.shape
    assert jnp.allclose(out, ref, atol=1e-4, rtol=1e-4), float(
        jnp.max(jnp.abs(out - ref))
    )

    print("KERNEL_OK")
</pallas_src>

<mosaic_0001>
module attributes {stable_mosaic.version = 11 : i64} {
  func.func @relu_conv1x1_kernel(%arg0: i32, %arg1: i32, %arg2: memref<1x256x196xf32, #tpu.memory_space<vmem>>, %arg3: memref<256x256xf32, #tpu.memory_space<vmem>>, %arg4: memref<1x256x196xf32, #tpu.memory_space<vmem>>) attributes {dimension_semantics = [#tpu.dimension_semantics<parallel>, #tpu.dimension_semantics<arbitrary>], iteration_bounds = array<i64: 1, 4>, scalar_prefetch = 0 : i64, scratch_operands = 0 : i64, tpu.core_type = #tpu.core_type<tc>, window_params = [{transform_indices = @transform_0, window_bounds = array<i64: 1, 256, 196>}, {transform_indices = @transform_1, window_bounds = array<i64: 256, 256>}, {transform_indices = @transform_2, window_bounds = array<i64: 1, 256, 196>}]} {
    %c0_i32 = arith.constant 0 : i32
    %0 = arith.cmpi eq, %arg1, %c0_i32 : i32
    %1 = arith.extui %0 : i1 to i32
    %c0_i32_0 = arith.constant 0 : i32
    %2 = arith.cmpi ne, %1, %c0_i32_0 : i32
    scf.if %2 {
      %cst_12 = arith.constant 0.000000e+00 : f32
      %15 = vector.broadcast %cst_12 : f32 to vector<256x196xf32>
      %c0_13 = arith.constant 0 : index
      %c0_14 = arith.constant 0 : index
      %c0_15 = arith.constant 0 : index
      %16 = vector.load %arg4[%c0_13, %c0_14, %c0_15] : memref<1x256x196xf32, #tpu.memory_space<vmem>>, vector<1x256x196xf32>
      %17 = vector.shape_cast %16 : vector<1x256x196xf32> to vector<256x196xf32>
      %18 = vector.shape_cast %15 : vector<256x196xf32> to vector<1x256x196xf32>
      tpu.vector_store %arg4[%c0_13, %c0_14, %c0_15], %18 {strides = array<i32>} : memref<1x256x196xf32, #tpu.memory_space<vmem>>, vector<1x256x196xf32>,
    } else {
    }
    %c0 = arith.constant 0 : index
    %c0_1 = arith.constant 0 : index
    %c0_2 = arith.constant 0 : index
    %3 = vector.load %arg2[%c0, %c0_1, %c0_2] : memref<1x256x196xf32, #tpu.memory_space<vmem>>, vector<1x256x196xf32>
    %4 = vector.shape_cast %3 : vector<1x256x196xf32> to vector<256x196xf32>
    %cst = arith.constant 0.000000e+00 : f32
    %5 = vector.broadcast %cst : f32 to vector<256x196xf32>
    %6 = arith.maximumf %4, %5 : vector<256x196xf32>
    %c0_3 = arith.constant 0 : index
    %c0_4 = arith.constant 0 : index
    %c0_5 = arith.constant 0 : index
    %7 = vector.load %arg4[%c0_3, %c0_4, %c0_5] : memref<1x256x196xf32, #tpu.memory_space<vmem>>, vector<1x256x196xf32>
    %8 = vector.shape_cast %7 : vector<1x256x196xf32> to vector<256x196xf32>
    %c0_6 = arith.constant 0 : index
    %c0_7 = arith.constant 0 : index
    %9 = vector.load %arg3[%c0_6, %c0_7] : memref<256x256xf32, #tpu.memory_space<vmem>>, vector<256x256xf32>
    %cst_8 = arith.constant dense<0.000000e+00> : vector<256x196xf32>
    %10 = tpu.matmul %9, %6, %cst_8 {dimension_numbers = #tpu.dot_dimension_numbers<[1], [0], [0], [1], [0, 0, 1, 1], [], []>} : vector<256x256xf32>, vector<256x196xf32>, vector<256x196xf32> -> vector<256x196xf32>
    %11 = arith.addf %8, %10 : vector<256x196xf32>
    %c0_9 = arith.constant 0 : index
    %c0_10 = arith.constant 0 : index
    %c0_11 = arith.constant 0 : index
    %12 = vector.load %arg4[%c0_9, %c0_10, %c0_11] : memref<1x256x196xf32, #tpu.memory_space<vmem>>, vector<1x256x196xf32>
    %13 = vector.shape_cast %12 : vector<1x256x196xf32> to vector<256x196xf32>
    %14 = vector.shape_cast %11 : vector<256x196xf32> to vector<1x256x196xf32>
    tpu.vector_store %arg4[%c0_9, %c0_10, %c0_11], %14 {strides = array<i32>} : memref<1x256x196xf32, #tpu.memory_space<vmem>>, vector<1x256x196xf32>,
    return
  }
  func.func @transform_0(%arg0: i32, %arg1: i32) -> (i32, i32, i32) {
    %c0_i32 = arith.constant 0 : i32
    %c0_i32_0 = arith.constant 0 : i32
    return %arg0, %arg1, %c0_i32 : i32, i32, i32
  }
  func.func @transform_1(%arg0: i32, %arg1: i32) -> (i32, i32) {
    %c0_i32 = arith.constant 0 : i32
    %c0_i32_0 = arith.constant 0 : i32
    return %c0_i32, %arg1 : i32, i32
  }
  func.func @transform_2(%arg0: i32, %arg1: i32) -> (i32, i32, i32) {
    %c0_i32 = arith.constant 0 : i32
    %c0_i32_0 = arith.constant 0 : i32
    %c0_i32_1 = arith.constant 0 : i32
    return %arg0, %c0_i32, %c0_i32_0 : i32, i32, i32
  }
}

</mosaic_0001>

<bundles_post_ra>
// kernel: relu_conv1x1.1
= control target key start
LH: loop header
LB: loop body
LE: loop exit
PB: predicated region body
PF: predicated region fallthrough
CT: control target
= control target key end

     0   :  { %s1450_s9 = smov 0   ;;  %s1452_s10 = smov 0   ;;  %s2484_s0 = inlined_call_operand.vmem [shape: f32[1,1024,196], index: 0, kind: input, shape index: {}]   ;;  %s2485_s1 = inlined_call_operand.vmem [shape: f32[256,1024], index: 1, kind: input, shape index: {}]   ;;  %s2486_s2 = inlined_call_operand.vmem [shape: f32[1,256,196], index: 2, kind: output, shape index: {}]  }
   0x1   :  { %s1454_s11 = smov 0   ;;  %s1456_s12 = smov 0  }
   0x2   :  { %s1458_s13 = smov 0  }
   0x3 LB: > { %s21_s14 = sadd.s32 1, %s1428_s12  ;;  %p66_p1 = scmp.ne.s32.totalorder %s1420_s10, %s1416_s9  ;;  %s1432_s13 = sphi %s1458_s13, %s12_s13   ;;  %s1428_s12 = sphi %s1456_s12, %s2490_s12   ;;  %s1424_s11 = sphi %s1454_s11, %s2489_s11   ;;  %s1420_s10 = sphi %s1452_s10, %s2488_s10   ;;  %s1416_s9 = sphi %s1450_s9, %s2487_s9  }
   0x4   : > { %p22_p0 = scmp.ge.s32.totalorder %s21_s14, 4  ;;  %p67_p2 = scmp.eq.s32.totalorder %s1432_s13, 0 }
   0x5   : > { %s59_s16 = sadd.s32 1, %s1420_s10  ;;  %p1338_p5 = scmp.ge.s32.totalorder %s1432_s13, 4 }
   0x6   : > { %s2492_s14 = smov (%p22_p0, %s21_s14), 0  ;;  %p68_p3 = por %p67_p2, %p66_p1 }
   0x7   : > { %s56_s15 = ssub.s32 %s1428_s12, %s2492_s14  ;;  %118 = sbr.rel (%p1338_p5) target bundleno = 80 (0x50), region = 16 }
   0x8   : > { %p57_p4 = scmp.eq.s32.totalorder %s56_s15, 0 }
   0xa   : > { %s1485_s17 = scalar_select %p57_p4, %s1420_s10, %s59_s16  }
   0xc   : > { %135 = sbr.rel (!%p68_p3) target bundleno = 80 (0x50), region = 24  ;;  %s137_s18 = sand.u32 (%p68_p3), 1, %s1420_s10  }
   0xd   : > { %s1351_s19 = sshll.u32 (%p68_p3), %s1428_s12, 4  ;;  %s1339_s20 = sshll.u32 (%p68_p3), %s137_s18, 9 }
   0xe   : > { %s1493_s23 = scalar_lea.vmem (%p68_p3), %s2485_s1, %s1351_s19  ;;  %s1498_s24 = scalar_lea.vmem (%p68_p3), [#allocation2], %s1339_s20 }
   0xf   : > { %v155_v0 = vld [vmem:[%s1493_s23] sm:$0xff] (%p68_p3)  ;;  %v157_v1 = vld [vmem:[%s1493_s23 + $0x8] sm:$0xff] (%p68_p3) }
  0x10   : > { %v159_v2 = vld [vmem:[%s1493_s23 + $0x40] sm:$0xff] (%p68_p3)  ;;  %156 = vst [vmem:[%s1498_s24] sm:$0xff] (%p68_p3), %v155_v0  ;;  %v161_v3 = vld [vmem:[%s1493_s23 + $0x48] sm:$0xff] (%p68_p3) }
  0x11   : > { %158 = vst [vmem:[%s1498_s24 + $0x8] sm:$0xff] %v157_v1  ;;  %v163_v4 = vld [vmem:[%s1493_s23 + $0x80] sm:$0xff]  ;;  %v165_v5 = vld [vmem:[%s1493_s23 + $0x88] sm:$0xff] }
  0x12   : > { %160 = vst [vmem:[%s1498_s24 + $0x10] sm:$0xff] %v159_v2  ;;  %v167_v6 = vld [vmem:[%s1493_s23 + $0xc0] sm:$0xff]  ;;  %v169_v7 = vld [vmem:[%s1493_s23 + $0xc8] sm:$0xff] }
  0x13   : > { %162 = vst [vmem:[%s1498_s24 + $0x18] sm:$0xff] %v161_v3  ;;  %v171_v8 = vld [vmem:[%s1493_s23 + $0x100] sm:$0xff]  ;;  %v173_v9 = vld [vmem:[%s1493_s23 + $0x108] sm:$0xff] }
  0x14   : > { %164 = vst [vmem:[%s1498_s24 + $0x20] sm:$0xff] %v163_v4  ;;  %v175_v10 = vld [vmem:[%s1493_s23 + $0x140] sm:$0xff]  ;;  %v177_v11 = vld [vmem:[%s1493_s23 + $0x148] sm:$0xff] }
  0x15   : > { %166 = vst [vmem:[%s1498_s24 + $0x28] sm:$0xff] %v165_v5  ;;  %v179_v12 = vld [vmem:[%s1493_s23 + $0x180] sm:$0xff]  ;;  %v181_v13 = vld [vmem:[%s1493_s23 + $0x188] sm:$0xff] }
  0x16   : > { %168 = vst [vmem:[%s1498_s24 + $0x30] sm:$0xff] %v167_v6  ;;  %v183_v14 = vld [vmem:[%s1493_s23 + $0x1c0] sm:$0xff]  ;;  %v185_v15 = vld [vmem:[%s1493_s23 + $0x1c8] sm:$0xff] }
  0x17   : > { %170 = vst [vmem:[%s1498_s24 + $0x38] sm:$0xff] %v169_v7  ;;  %v187_v16 = vld [vmem:[%s1493_s23 + $0x200] sm:$0xff]  ;;  %v189_v17 = vld [vmem:[%s1493_s23 + $0x208] sm:$0xff] }
  0x18   : > { %172 = vst [vmem:[%s1498_s24 + $0x40] sm:$0xff] %v171_v8  ;;  %v191_v18 = vld [vmem:[%s1493_s23 + $0x240] sm:$0xff]  ;;  %v193_v19 = vld [vmem:[%s1493_s23 + $0x248] sm:$0xff] }
  0x19   : > { %174 = vst [vmem:[%s1498_s24 + $0x48] sm:$0xff] %v173_v9  ;;  %v195_v20 = vld [vmem:[%s1493_s23 + $0x280] sm:$0xff]  ;;  %v197_v21 = vld [vmem:[%s1493_s23 + $0x288] sm:$0xff] }
  0x1a   : > { %176 = vst [vmem:[%s1498_s24 + $0x50] sm:$0xff] %v175_v10  ;;  %v199_v22 = vld [vmem:[%s1493_s23 + $0x2c0] sm:$0xff]  ;;  %v201_v23 = vld [vmem:[%s1493_s23 + $0x2c8] sm:$0xff] }
  0x1b   : > { %178 = vst [vmem:[%s1498_s24 + $0x58] sm:$0xff] %v177_v11  ;;  %v203_v24 = vld [vmem:[%s1493_s23 + $0x300] sm:$0xff]  ;;  %v205_v25 = vld [vmem:[%s1493_s23 + $0x308] sm:$0xff] }
  0x1c   : > { %180 = vst [vmem:[%s1498_s24 + $0x60] sm:$0xff] %v179_v12  ;;  %v207_v26 = vld [vmem:[%s1493_s23 + $0x340] sm:$0xff]  ;;  %v209_v27 = vld [vmem:[%s1493_s23 + $0x348] sm:$0xff] }
  0x1d   : > { %182 = vst [vmem:[%s1498_s24 + $0x68] sm:$0xff] %v181_v13  ;;  %v211_v28 = vld [vmem:[%s1493_s23 + $0x380] sm:$0xff]  ;;  %v213_v29 = vld [vmem:[%s1493_s23 + $0x388] sm:$0xff] }
  0x1e   : > { %184 = vst [vmem:[%s1498_s24 + $0x70] sm:$0xff] %v183_v14  ;;  %v215_v30 = vld [vmem:[%s1493_s23 + $0x3c0] sm:$0xff]  ;;  %v217_v31 = vld [vmem:[%s1493_s23 + $0x3c8] sm:$0xff] }
  0x1f   : > { %186 = vst [vmem:[%s1498_s24 + $0x78] sm:$0xff] %v185_v15  ;;  %v219_v32 = vld [vmem:[%s1493_s23 + $0x400] sm:$0xff]  ;;  %v221_v33 = vld [vmem:[%s1493_s23 + $0x408] sm:$0xff] }
  0x20   : > { %188 = vst [vmem:[%s1498_s24 + $0x80] sm:$0xff] %v187_v16  ;;  %v223_v34 = vld [vmem:[%s1493_s23 + $0x440] sm:$0xff]  ;;  %v225_v35 = vld [vmem:[%s1493_s23 + $0x448] sm:$0xff] }
  0x21   : > { %190 = vst [vmem:[%s1498_s24 + $0x88] sm:$0xff] %v189_v17  ;;  %v227_v36 = vld [vmem:[%s1493_s23 + $0x480] sm:$0xff]  ;;  %v229_v37 = vld [vmem:[%s1493_s23 + $0x488] sm:$0xff] }
  0x22   : > { %192 = vst [vmem:[%s1498_s24 + $0x90] sm:$0xff] %v191_v18  ;;  %v231_v38 = vld [vmem:[%s1493_s23 + $0x4c0] sm:$0xff]  ;;  %v233_v39 = vld [vmem:[%s1493_s23 + $0x4c8] sm:$0xff] }
  0x23   : > { %194 = vst [vmem:[%s1498_s24 + $0x98] sm:$0xff] %v193_v19  ;;  %v235_v40 = vld [vmem:[%s1493_s23 + $0x500] sm:$0xff]  ;;  %v237_v41 = vld [vmem:[%s1493_s23 + $0x508] sm:$0xff] }
  0x24   : > { %196 = vst [vmem:[%s1498_s24 + $0xa0] sm:$0xff] %v195_v20  ;;  %v239_v42 = vld [vmem:[%s1493_s23 + $0x540] sm:$0xff]  ;;  %v241_v43 = vld [vmem:[%s1493_s23 + $0x548] sm:$0xff] }
  0x25   : > { %198 = vst [vmem:[%s1498_s24 + $0xa8] sm:$0xff] %v197_v21  ;;  %v243_v44 = vld [vmem:[%s1493_s23 + $0x580] sm:$0xff]  ;;  %v245_v45 = vld [vmem:[%s1493_s23 + $0x588] sm:$0xff] }
  0x26   : > { %200 = vst [vmem:[%s1498_s24 + $0xb0] sm:$0xff] %v199_v22  ;;  %v247_v46 = vld [vmem:[%s1493_s23 + $0x5c0] sm:$0xff]  ;;  %v249_v47 = vld [vmem:[%s1493_s23 + $0x5c8] sm:$0xff] }
  0x27   : > { %202 = vst [vmem:[%s1498_s24 + $0xb8] sm:$0xff] %v201_v23  ;;  %v251_v48 = vld [vmem:[%s1493_s23 + $0x600] sm:$0xff]  ;;  %v253_v49 = vld [vmem:[%s1493_s23 + $0x608] sm:$0xff] }
  0x28   : > { %204 = vst [vmem:[%s1498_s24 + $0xc0] sm:$0xff] %v203_v24  ;;  %v255_v50 = vld [vmem:[%s1493_s23 + $0x640] sm:$0xff]  ;;  %v257_v51 = vld [vmem:[%s1493_s23 + $0x648] sm:$0xff] }
  0x29   : > { %206 = vst [vmem:[%s1498_s24 + $0xc8] sm:$0xff] %v205_v25  ;;  %v259_v52 = vld [vmem:[%s1493_s23 + $0x680] sm:$0xff]  ;;  %v261_v53 = vld [vmem:[%s1493_s23 + $0x688] sm:$0xff] }
  0x2a   : > { %208 = vst [vmem:[%s1498_s24 + $0xd0] sm:$0xff] %v207_v26  ;;  %v263_v54 = vld [vmem:[%s1493_s23 + $0x6c0] sm:$0xff]  ;;  %v265_v55 = vld [vmem:[%s1493_s23 + $0x6c8] sm:$0xff] }
  0x2b   : > { %210 = vst [vmem:[%s1498_s24 + $0xd8] sm:$0xff] %v209_v27  ;;  %v267_v56 = vld [vmem:[%s1493_s23 + $0x700] sm:$0xff]  ;;  %v269_v57 = vld [vmem:[%s1493_s23 + $0x708] sm:$0xff] }
  0x2c   : > { %212 = vst [vmem:[%s1498_s24 + $0xe0] sm:$0xff] %v211_v28  ;;  %v271_v58 = vld [vmem:[%s1493_s23 + $0x740] sm:$0xff]  ;;  %v273_v59 = vld [vmem:[%s1493_s23 + $0x748] sm:$0xff] }
  0x2d   : > { %214 = vst [vmem:[%s1498_s24 + $0xe8] sm:$0xff] %v213_v29  ;;  %v275_v60 = vld [vmem:[%s1493_s23 + $0x780] sm:$0xff]  ;;  %v277_v61 = vld [vmem:[%s1493_s23 + $0x788] sm:$0xff] }
  0x2e   : > { %216 = vst [vmem:[%s1498_s24 + $0xf0] sm:$0xff] %v215_v30  ;;  %v279_v62 = vld [vmem:[%s1493_s23 + $0x7c0] sm:$0xff]  ;;  %v281_v63 = vld [vmem:[%s1493_s23 + $0x7c8] sm:$0xff] }
  0x2f   : > { %218 = vst [vmem:[%s1498_s24 + $0xf8] sm:$0xff] %v217_v31 }
  0x30   : > { %220 = vst [vmem:[%s1498_s24 + $0x100] sm:$0xff] %v219_v32 }
  0x31   : > { %222 = vst [vmem:[%s1498_s24 + $0x108] sm:$0xff] %v221_v33 }
  0x32   : > { %224 = vst [vmem:[%s1498_s24 + $0x110] sm:$0xff] %v223_v34 }
  0x33   : > { %226 = vst [vmem:[%s1498_s24 + $0x118] sm:$0xff] %v225_v35 }
  0x34   : > { %228 = vst [vmem:[%s1498_s24 + $0x120] sm:$0xff] %v227_v36 }
  0x35   : > { %230 = vst [vmem:[%s1498_s24 + $0x128] sm:$0xff] %v229_v37 }
  0x36   : > { %232 = vst [vmem:[%s1498_s24 + $0x130] sm:$0xff] %v231_v38 }
  0x37   : > { %234 = vst [vmem:[%s1498_s24 + $0x138] sm:$0xff] %v233_v39 }
  0x38   : > { %236 = vst [vmem:[%s1498_s24 + $0x140] sm:$0xff] %v235_v40 }
  0x39   : > { %238 = vst [vmem:[%s1498_s24 + $0x148] sm:$0xff] %v237_v41 }
  0x3a   : > { %240 = vst [vmem:[%s1498_s24 + $0x150] sm:$0xff] %v239_v42 }
  0x3b   : > { %242 = vst [vmem:[%s1498_s24 + $0x158] sm:$0xff] %v241_v43 }
  0x3c   : > { %244 = vst [vmem:[%s1498_s24 + $0x160] sm:$0xff] %v243_v44 }
  0x3d   : > { %246 = vst [vmem:[%s1498_s24 + $0x168] sm:$0xff] %v245_v45 }
  0x3e   : > { %248 = vst [vmem:[%s1498_s24 + $0x170] sm:$0xff] %v247_v46 }
  0x3f   : > { %250 = vst [vmem:[%s1498_s24 + $0x178] sm:$0xff] %v249_v47 }
  0x40   : > { %252 = vst [vmem:[%s1498_s24 + $0x180] sm:$0xff] %v251_v48 }
  0x41   : > { %254 = vst [vmem:[%s1498_s24 + $0x188] sm:$0xff] %v253_v49 }
  0x42   : > { %256 = vst [vmem:[%s1498_s24 + $0x190] sm:$0xff] %v255_v50 }
  0x43   : > { %258 = vst [vmem:[%s1498_s24 + $0x198] sm:$0xff] %v257_v51 }
  0x44   : > { %260 = vst [vmem:[%s1498_s24 + $0x1a0] sm:$0xff] %v259_v52 }
  0x45   : > { %262 = vst [vmem:[%s1498_s24 + $0x1a8] sm:$0xff] %v261_v53 }
  0x46   : > { %264 = vst [vmem:[%s1498_s24 + $0x1b0] sm:$0xff] %v263_v54 }
  0x47   : > { %266 = vst [vmem:[%s1498_s24 + $0x1b8] sm:$0xff] %v265_v55 }
  0x48   : > { %268 = vst [vmem:[%s1498_s24 + $0x1c0] sm:$0xff] %v267_v56 }
  0x49   : > { %270 = vst [vmem:[%s1498_s24 + $0x1c8] sm:$0xff] %v269_v57 }
  0x4a   : > { %272 = vst [vmem:[%s1498_s24 + $0x1d0] sm:$0xff] %v271_v58 }
  0x4b   : > { %274 = vst [vmem:[%s1498_s24 + $0x1d8] sm:$0xff] %v273_v59 }
  0x4c   : > { %276 = vst [vmem:[%s1498_s24 + $0x1e0] sm:$0xff] %v275_v60 }
  0x4d   : > { %278 = vst [vmem:[%s1498_s24 + $0x1e8] sm:$0xff] %v277_v61 }
  0x4e   : > { %280 = vst [vmem:[%s1498_s24 + $0x1f0] sm:$0xff] %v279_v62 }
  0x4f   : > { %282 = vst [vmem:[%s1498_s24 + $0x1f8] sm:$0xff] %v281_v63 }
  0x50 PF: > { %p1342_p6 = scmp.ge.s32.totalorder %s1432_s13, 1  ;;  %p287_p7 = scmp.lt.s32.totalorder %s1432_s13, 5 }
  0x52   : > { %p288_p8 = pnand %p1342_p6, %p287_p7 }
  0x53   : > { %s294_s25 = sand.u32 (!%p288_p8), 1, %s1416_s9   ;;  %s1344_s26 = sshll.u32 (!%p288_p8), %s1424_s11, 5 }
  0x54   : > { %291 = sbr.rel (%p288_p8) target bundleno = 579 (0x243), region = 47  ;;  %s1343_s27 = sshll.u32 (!%p288_p8), %s294_s25, 9 }
  0x55   : > { %p328_p9 = scmp.lt.s32.totalorder (!%p288_p8), %s1344_s26, 127  ;;  %s1634_s4 = scalar_lea.vmem (!%p288_p8), [#allocation2], %s1343_s27 }
  0x56   : > { %p1347_p10 = scmp.ne.s32.totalorder (!%p288_p8), %s1424_s11, 0 }
  0x59   : > { %s2494_s26 = smov (!%p328_p9, %s1344_s26), 127  ;;  %345 = sbr.rel (%p1347_p10) target bundleno = 159 (0x9f), region = 55 }
  0x5a   : > { %s1352_s28 = sshll.u32 %s2494_s26, 4 }
  0x5b   : > { %s1632_s3 = scalar_lea.vmem %s2484_s0, %s1352_s28 }
  0x5e   : > { %v1434_v0 = vmov 0.0   ;;  %vm347_vm0 = vcmask 556032  }
  0x5f   : > { %346 = vst [vmem:[%s2486_s2] sm:$0xff] %v1434_v0 }
  0x60   : > { %349 = vst [vmem:[%s2486_s2 + $0x10] sm:$0xff] %v1434_v0 }
  0x61   : > { %351 = vst [vmem:[%s2486_s2 + $0x20] sm:$0xff] %v1434_v0 }
  0x62   : > { %353 = vst [vmem:[%s2486_s2 + $0x30] sm:$0xff] %v1434_v0 }
  0x63   : > { %355 = vst [vmem:[%s2486_s2 + $0x40] sm:$0xff] %v1434_v0 }
  0x64   : > { %357 = vst [vmem:[%s2486_s2 + $0x50] sm:$0xff] %v1434_v0 }
  0x65   : > { %359 = vst [vmem:[%s2486_s2 + $0x60] sm:$0xff] %v1434_v0 }
  0x66   : > { %361 = vst [vmem:[%s2486_s2 + $0x70] sm:$0xff] %v1434_v0 }
  0x67   : > { %363 = vst [vmem:[%s2486_s2 + $0x80] sm:$0xff] %v1434_v0 }
  0x68   : > { %365 = vst [vmem:[%s2486_s2 + $0x90] sm:$0xff] %v1434_v0 }
  0x69   : > { %367 = vst [vmem:[%s2486_s2 + $0xa0] sm:$0xff] %v1434_v0 }
  0x6a   : > { %369 = vst [vmem:[%s2486_s2 + $0xb0] sm:$0xff] %v1434_v0 }
  0x6b   : > { %371 = vst [vmem:[%s2486_s2 + $0xc0] sm:$0xff] %v1434_v0 }
  0x6c   : > { %373 = vst [vmem:[%s2486_s2 + $0xd0] sm:$0xff] %v1434_v0 }
  0x6d   : > { %375 = vst [vmem:[%s2486_s2 + $0xe0] sm:$0xff] %v1434_v0 }
  0x6e   : > { %377 = vst [vmem:[%s2486_s2 + $0xf0] sm:$0xff] %v1434_v0 }
  0x6f   : > { %379 = vst [vmem:[%s2486_s2 + $0x100] sm:$0xff] %v1434_v0 }
  0x70   : > { %381 = vst [vmem:[%s2486_s2 + $0x110] sm:$0xff] %v1434_v0 }
  0x71   : > { %383 = vst [vmem:[%s2486_s2 + $0x120] sm:$0xff] %v1434_v0 }
  0x72   : > { %385 = vst [vmem:[%s2486_s2 + $0x130] sm:$0xff] %v1434_v0 }
  0x73   : > { %387 = vst [vmem:[%s2486_s2 + $0x140] sm:$0xff] %v1434_v0 }
  0x74   : > { %389 = vst [vmem:[%s2486_s2 + $0x150] sm:$0xff] %v1434_v0 }
  0x75   : > { %391 = vst [vmem:[%s2486_s2 + $0x160] sm:$0xff] %v1434_v0 }
  0x76   : > { %393 = vst [vmem:[%s2486_s2 + $0x170] sm:$0xff] %v1434_v0 }
  0x77   : > { %395 = vst [vmem:[%s2486_s2 + $0x180] sm:$0xff] %v1434_v0 }
  0x78   : > { %397 = vst [vmem:[%s2486_s2 + $0x190] sm:$0xff] %v1434_v0 }
  0x79   : > { %399 = vst [vmem:[%s2486_s2 + $0x1a0] sm:$0xff] %v1434_v0 }
  0x7a   : > { %401 = vst [vmem:[%s2486_s2 + $0x1b0] sm:$0xff] %v1434_v0 }
  0x7b   : > { %403 = vst [vmem:[%s2486_s2 + $0x1c0] sm:$0xff] %v1434_v0 }
  0x7c   : > { %405 = vst [vmem:[%s2486_s2 + $0x1d0] sm:$0xff] %v1434_v0 }
  0x7d   : > { %407 = vst [vmem:[%s2486_s2 + $0x1e0] sm:$0xff] %v1434_v0 }
  0x7e   : > { %409 = vst [vmem:[%s2486_s2 + $0x1f0] sm:$0xff] %v1434_v0 }
  0x7f   : > { %348 = vst.msk [vmem:[%s2486_s2 + $0x8] sm:$0xff] %vm347_vm0, %v1434_v0 }
  0x80   : > { %350 = vst.msk [vmem:[%s2486_s2 + $0x18] sm:$0xff] %vm347_vm0, %v1434_v0 }
  0x81   : > { %352 = vst.msk [vmem:[%s2486_s2 + $0x28] sm:$0xff] %vm347_vm0, %v1434_v0 }
  0x82   : > { %354 = vst.msk [vmem:[%s2486_s2 + $0x38] sm:$0xff] %vm347_vm0, %v1434_v0 }
  0x83   : > { %356 = vst.msk [vmem:[%s2486_s2 + $0x48] sm:$0xff] %vm347_vm0, %v1434_v0 }
  0x84   : > { %358 = vst.msk [vmem:[%s2486_s2 + $0x58] sm:$0xff] %vm347_vm0, %v1434_v0 }
  0x85   : > { %360 = vst.msk [vmem:[%s2486_s2 + $0x68] sm:$0xff] %vm347_vm0, %v1434_v0 }
  0x86   : > { %362 = vst.msk [vmem:[%s2486_s2 + $0x78] sm:$0xff] %vm347_vm0, %v1434_v0 }
  0x87   : > { %364 = vst.msk [vmem:[%s2486_s2 + $0x88] sm:$0xff] %vm347_vm0, %v1434_v0 }
  0x88   : > { %366 = vst.msk [vmem:[%s2486_s2 + $0x98] sm:$0xff] %vm347_vm0, %v1434_v0 }
  0x89   : > { %368 = vst.msk [vmem:[%s2486_s2 + $0xa8] sm:$0xff] %vm347_vm0, %v1434_v0 }
  0x8a   : > { %370 = vst.msk [vmem:[%s2486_s2 + $0xb8] sm:$0xff] %vm347_vm0, %v1434_v0 }
  0x8b   : > { %372 = vst.msk [vmem:[%s2486_s2 + $0xc8] sm:$0xff] %vm347_vm0, %v1434_v0 }
  0x8c   : > { %374 = vst.msk [vmem:[%s2486_s2 + $0xd8] sm:$0xff] %vm347_vm0, %v1434_v0 }
  0x8d   : > { %376 = vst.msk [vmem:[%s2486_s2 + $0xe8] sm:$0xff] %vm347_vm0, %v1434_v0 }
  0x8e   : > { %378 = vst.msk [vmem:[%s2486_s2 + $0xf8] sm:$0xff] %vm347_vm0, %v1434_v0 }
  0x8f   : > { %380 = vst.msk [vmem:[%s2486_s2 + $0x108] sm:$0xff] %vm347_vm0, %v1434_v0 }
  0x90   : > { %382 = vst.msk [vmem:[%s2486_s2 + $0x118] sm:$0xff] %vm347_vm0, %v1434_v0 }
  0x91   : > { %384 = vst.msk [vmem:[%s2486_s2 + $0x128] sm:$0xff] %vm347_vm0, %v1434_v0 }
  0x92   : > { %386 = vst.msk [vmem:[%s2486_s2 + $0x138] sm:$0xff] %vm347_vm0, %v1434_v0 }
  0x93   : > { %388 = vst.msk [vmem:[%s2486_s2 + $0x148] sm:$0xff] %vm347_vm0, %v1434_v0 }
  0x94   : > { %390 = vst.msk [vmem:[%s2486_s2 + $0x158] sm:$0xff] %vm347_vm0, %v1434_v0 }
  0x95   : > { %392 = vst.msk [vmem:[%s2486_s2 + $0x168] sm:$0xff] %vm347_vm0, %v1434_v0 }
  0x96   : > { %394 = vst.msk [vmem:[%s2486_s2 + $0x178] sm:$0xff] %vm347_vm0, %v1434_v0 }
  0x97   : > { %396 = vst.msk [vmem:[%s2486_s2 + $0x188] sm:$0xff] %vm347_vm0, %v1434_v0 }
  0x98   : > { %398 = vst.msk [vmem:[%s2486_s2 + $0x198] sm:$0xff] %vm347_vm0, %v1434_v0 }
  0x99   : > { %400 = vst.msk [vmem:[%s2486_s2 + $0x1a8] sm:$0xff] %vm347_vm0, %v1434_v0 }
  0x9a   : > { %402 = vst.msk [vmem:[%s2486_s2 + $0x1b8] sm:$0xff] %vm347_vm0, %v1434_v0 }
  0x9b   : > { %404 = vst.msk [vmem:[%s2486_s2 + $0x1c8] sm:$0xff] %vm347_vm0, %v1434_v0 }
  0x9c   : > { %406 = vst.msk [vmem:[%s2486_s2 + $0x1d8] sm:$0xff] %vm347_vm0, %v1434_v0 }
  0x9d   : > { %408 = vst.msk [vmem:[%s2486_s2 + $0x1e8] sm:$0xff] %vm347_vm0, %v1434_v0 }
  0x9e   : > { %410 = vst.msk [vmem:[%s2486_s2 + $0x1f8] sm:$0xff] %vm347_vm0, %v1434_v0 }
  0x9f PF: > { %v442_v1 = vld [vmem:[%s1632_s3 + $0xf8] sm:$0xff]  ;;  %v440_v3 = vld [vmem:[%s1632_s3 + $0xe8] sm:$0xff]  ;;  %v441_v12 = vld [vmem:[%s1632_s3 + $0xf0] sm:$0xff]  ;;  %vm1184_vm1 = vcmask 556032  }
  0xa0   : > { %v474_v2 = vld [vmem:[%s1632_s3 + $0x1f8] sm:$0xff]  ;;  %v506_v4 = vmax.f32 %v442_v1, 0.0  ;;  %v504_v6 = vmax.f32 %v440_v3, 0.0  ;;  %v472_v7 = vld [vmem:[%s1632_s3 + $0x1e8] sm:$0xff]  ;;  %v473_v13 = vld [vmem:[%s1632_s3 + $0x1f0] sm:$0xff]  ;;  %v505_v16 = vmax.f32 %v441_v12, 0.0 }
  0xa1   : > { %v538_v5 = vmax.f32 %v474_v2, 0.0  ;;  %v438_v8 = vld [vmem:[%s1632_s3 + $0xd8] sm:$0xff]  ;;  %v536_v10 = vmax.f32 %v472_v7, 0.0  ;;  %v436_v14 = vld [vmem:[%s1632_s3 + $0xc8] sm:$0xff]  ;;  %v537_v17 = vmax.f32 %v473_v13, 0.0  ;;  %v439_v19 = vld [vmem:[%s1632_s3 + $0xe0] sm:$0xff] }
  0xa2   : > { %v470_v9 = vld [vmem:[%s1632_s3 + $0x1d8] sm:$0xff]  ;;  %v502_v11 = vmax.f32 %v438_v8, 0.0  ;;  %893 = vmatpush.msra.mxu2 %v506_v4  ;;  %v468_v18 = vld [vmem:[%s1632_s3 + $0x1c8] sm:$0xff]  ;;  %v471_v20 = vld [vmem:[%s1632_s3 + $0x1e0] sm:$0xff]  ;;  %v503_v21 = vmax.f32 %v439_v19, 0.0  ;;  %v500_v26 = vmax.f32 %v436_v14, 0.0  ;;  %667 = vmatpush.msra.mxu0 %v505_v16 }
  0xa3   : > { %1006 = vmatpush.msra.mxu3 %v538_v5  ;;  %v534_v15 = vmax.f32 %v470_v9, 0.0  ;;  %v535_v22 = vmax.f32 %v471_v20, 0.0  ;;  %v434_v23 = vld [vmem:[%s1632_s3 + $0xb8] sm:$0xff]  ;;  %v437_v25 = vld [vmem:[%s1632_s3 + $0xd0] sm:$0xff]  ;;  %v532_v27 = vmax.f32 %v468_v18, 0.0  ;;  %v432_v29 = vld [vmem:[%s1632_s3 + $0xa8] sm:$0xff]  ;;  %780 = vmatpush.msra.mxu1 %v537_v17 }
  0xa4   : > { %v466_v24 = vld [vmem:[%s1632_s3 + $0x1b8] sm:$0xff]  ;;  %894 = vmatpush.msra.mxu2 %v504_v6  ;;  %v469_v28 = vld [vmem:[%s1632_s3 + $0x1d0] sm:$0xff]  ;;  %v501_v30 = vmax.f32 %v437_v25, 0.0  ;;  %v464_v32 = vld [vmem:[%s1632_s3 + $0x1a8] sm:$0xff]  ;;  %v498_v35 = vmax.f32 %v434_v23, 0.0  ;;  %668 = vmatpush.msra.mxu0 %v503_v21  ;;  %v496_v43 = vmax.f32 %v432_v29, 0.0 }
  0xa5   : > { %1007 = vmatpush.msra.mxu3 %v536_v10  ;;  %v533_v31 = vmax.f32 %v469_v28, 0.0  ;;  %v435_v33 = vld [vmem:[%s1632_s3 + $0xc0] sm:$0xff]  ;;  %v530_v36 = vmax.f32 %v466_v24, 0.0  ;;  %v433_v37 = vld [vmem:[%s1632_s3 + $0xb0] sm:$0xff]  ;;  %781 = vmatpush.msra.mxu1 %v535_v22  ;;  %v430_v41 = vld [vmem:[%s1632_s3 + $0x98] sm:$0xff]  ;;  %v528_v44 = vmax.f32 %v464_v32, 0.0 }
  0xa6   : > { %v467_v34 = vld [vmem:[%s1632_s3 + $0x1c0] sm:$0xff]  ;;  %895 = vmatpush.msra.mxu2 %v502_v11  ;;  %v465_v38 = vld [vmem:[%s1632_s3 + $0x1b0] sm:$0xff]  ;;  %v499_v39 = vmax.f32 %v435_v33, 0.0  ;;  %v462_v42 = vld [vmem:[%s1632_s3 + $0x198] sm:$0xff]  ;;  %669 = vmatpush.msra.mxu0 %v501_v30  ;;  %v497_v47 = vmax.f32 %v433_v37, 0.0  ;;  %v494_v51 = vmax.f32 %v430_v41, 0.0 }
  0xa7   : > { %1008 = vmatpush.msra.mxu3 %v534_v15  ;;  %v531_v40 = vmax.f32 %v467_v34, 0.0  ;;  %v431_v45 = vld [vmem:[%s1632_s3 + $0xa0] sm:$0xff]  ;;  %782 = vmatpush.msra.mxu1 %v533_v31  ;;  %v529_v48 = vmax.f32 %v465_v38, 0.0  ;;  %v428_v49 = vld [vmem:[%s1632_s3 + $0x88] sm:$0xff]  ;;  %v526_v52 = vmax.f32 %v462_v42, 0.0  ;;  %v429_v53 = vld [vmem:[%s1632_s3 + $0x90] sm:$0xff] }
  0xa8   : > { %896 = vmatpush.msra.mxu2 %v500_v26  ;;  %v463_v46 = vld [vmem:[%s1632_s3 + $0x1a0] sm:$0xff]  ;;  %v460_v50 = vld [vmem:[%s1632_s3 + $0x188] sm:$0xff]  ;;  %v461_v54 = vld [vmem:[%s1632_s3 + $0x190] sm:$0xff]  ;;  %670 = vmatpush.msra.mxu0 %v499_v39  ;;  %v495_v55 = vmax.f32 %v431_v45, 0.0  ;;  %v492_v59 = vmax.f32 %v428_v49, 0.0  ;;  %v493_v63 = vmax.f32 %v429_v53, 0.0 }
  0xa9   : > { %1009 = vmatpush.msra.mxu3 %v532_v27  ;;  %783 = vmatpush.msra.mxu1 %v531_v40  ;;  %v527_v56 = vmax.f32 %v463_v46, 0.0  ;;  %v426_v57 = vld [vmem:[%s1632_s3 + $0x78] sm:$0xff]  ;;  %v524_v60 = vmax.f32 %v460_v50, 0.0  ;;  %v427_v61 = vld [vmem:[%s1632_s3 + $0x80] sm:$0xff]  ;;  %v525_v0 = vmax.f32 %v461_v54, 0.0  ;;  %v424_v1 = vld [vmem:[%s1632_s3 + $0x68] sm:$0xff] }
  0xaa   : > { %897 = vmatpush.msra.mxu2 %v498_v35  ;;  %v458_v58 = vld [vmem:[%s1632_s3 + $0x178] sm:$0xff]  ;;  %v459_v62 = vld [vmem:[%s1632_s3 + $0x180] sm:$0xff]  ;;  %671 = vmatpush.msra.mxu0 %v497_v47  ;;  %v456_v2 = vld [vmem:[%s1632_s3 + $0x168] sm:$0xff]  ;;  %v490_v3 = vmax.f32 %v426_v57, 0.0  ;;  %v491_v7 = vmax.f32 %v427_v61, 0.0  ;;  %v488_v11 = vmax.f32 %v424_v1, 0.0 }
  0xab   : > { %1010 = vmatpush.msra.mxu3 %v530_v36  ;;  %784 = vmatpush.msra.mxu1 %v529_v48  ;;  %v522_v4 = vmax.f32 %v458_v58, 0.0  ;;  %v425_v5 = vld [vmem:[%s1632_s3 + $0x70] sm:$0xff]  ;;  %v523_v8 = vmax.f32 %v459_v62, 0.0  ;;  %v422_v9 = vld [vmem:[%s1632_s3 + $0x58] sm:$0xff]  ;;  %v520_v12 = vmax.f32 %v456_v2, 0.0  ;;  %v423_v13 = vld [vmem:[%s1632_s3 + $0x60] sm:$0xff] }
  0xac   : > { %898 = vmatpush.msra.mxu2 %v496_v43  ;;  %v457_v6 = vld [vmem:[%s1632_s3 + $0x170] sm:$0xff]  ;;  %672 = vmatpush.msra.mxu0 %v495_v55  ;;  %v454_v10 = vld [vmem:[%s1632_s3 + $0x158] sm:$0xff]  ;;  %v455_v14 = vld [vmem:[%s1632_s3 + $0x160] sm:$0xff]  ;;  %v489_v15 = vmax.f32 %v425_v5, 0.0  ;;  %v486_v19 = vmax.f32 %v422_v9, 0.0  ;;  %v487_v23 = vmax.f32 %v423_v13, 0.0 }
  0xad   : > { %1011 = vmatpush.msra.mxu3 %v528_v44  ;;  %785 = vmatpush.msra.mxu1 %v527_v56  ;;  %v521_v16 = vmax.f32 %v457_v6, 0.0  ;;  %v420_v17 = vld [vmem:[%s1632_s3 + $0x48] sm:$0xff]  ;;  %v518_v20 = vmax.f32 %v454_v10, 0.0  ;;  %v421_v21 = vld [vmem:[%s1632_s3 + $0x50] sm:$0xff]  ;;  %v519_v24 = vmax.f32 %v455_v14, 0.0  ;;  %v418_v25 = vld [vmem:[%s1632_s3 + $0x38] sm:$0xff] }
  0xae   : > { %899 = vmatpush.msra.mxu2 %v494_v51  ;;  %673 = vmatpush.msra.mxu0 %v493_v63  ;;  %v452_v18 = vld [vmem:[%s1632_s3 + $0x148] sm:$0xff]  ;;  %v453_v22 = vld [vmem:[%s1632_s3 + $0x150] sm:$0xff]  ;;  %v450_v26 = vld [vmem:[%s1632_s3 + $0x138] sm:$0xff]  ;;  %v484_v27 = vmax.f32 %v420_v17, 0.0  ;;  %v485_v31 = vmax.f32 %v421_v21, 0.0  ;;  %v482_v35 = vmax.f32 %v418_v25, 0.0 }
  0xaf   : > { %1012 = vmatpush.msra.mxu3 %v526_v52  ;;  %786 = vmatpush.msra.mxu1 %v525_v0  ;;  %v516_v28 = vmax.f32 %v452_v18, 0.0  ;;  %v419_v29 = vld [vmem:[%s1632_s3 + $0x40] sm:$0xff]  ;;  %v517_v32 = vmax.f32 %v453_v22, 0.0  ;;  %v416_v33 = vld [vmem:[%s1632_s3 + $0x28] sm:$0xff]  ;;  %v514_v36 = vmax.f32 %v450_v26, 0.0  ;;  %v417_v37 = vld [vmem:[%s1632_s3 + $0x30] sm:$0xff] }
  0xb0   : > { %900 = vmatpush.msra.mxu2 %v492_v59  ;;  %674 = vmatpush.msra.mxu0 %v491_v7  ;;  %v451_v30 = vld [vmem:[%s1632_s3 + $0x140] sm:$0xff]  ;;  %v448_v34 = vld [vmem:[%s1632_s3 + $0x128] sm:$0xff]  ;;  %v449_v38 = vld [vmem:[%s1632_s3 + $0x130] sm:$0xff]  ;;  %v483_v39 = vmax.f32 %v419_v29, 0.0  ;;  %v480_v43 = vmax.f32 %v416_v33, 0.0  ;;  %v481_v47 = vmax.f32 %v417_v37, 0.0 }
  0xb1   : > { %1013 = vmatpush.msra.mxu3 %v524_v60  ;;  %787 = vmatpush.msra.mxu1 %v523_v8  ;;  %v515_v40 = vmax.f32 %v451_v30, 0.0  ;;  %v414_v41 = vld [vmem:[%s1632_s3 + $0x18] sm:$0xff]  ;;  %v512_v44 = vmax.f32 %v448_v34, 0.0  ;;  %v415_v45 = vld [vmem:[%s1632_s3 + $0x20] sm:$0xff]  ;;  %v513_v48 = vmax.f32 %v449_v38, 0.0  ;;  %v412_v49 = vld [vmem:[%s1632_s3 + $0x8] sm:$0xff] }
  0xb2   : > { %901 = vmatpush.msra.mxu2 %v490_v3  ;;  %675 = vmatpush.msra.mxu0 %v489_v15  ;;  %v446_v42 = vld [vmem:[%s1632_s3 + $0x118] sm:$0xff]  ;;  %v447_v46 = vld [vmem:[%s1632_s3 + $0x120] sm:$0xff]  ;;  %v444_v50 = vld [vmem:[%s1632_s3 + $0x108] sm:$0xff]  ;;  %v478_v51 = vmax.f32 %v414_v41, 0.0  ;;  %v479_v53 = vmax.f32 %v415_v45, 0.0  ;;  %v476_v57 = vmax.f32 %v412_v49, 0.0 }
  0xb3   : > { %1014 = vmatpush.msra.mxu3 %v522_v4  ;;  %788 = vmatpush.msra.mxu1 %v521_v16  ;;  %v510_v52 = vmax.f32 %v446_v42, 0.0  ;;  %v511_v54 = vmax.f32 %v447_v46, 0.0  ;;  %v413_v55 = vld [vmem:[%s1632_s3 + $0x10] sm:$0xff]  ;;  %v508_v58 = vmax.f32 %v444_v50, 0.0  ;;  %v411_v59 = vld [vmem:[%s1632_s3] sm:$0xff]  ;;  %v604_v62 = vld [vmem:[%s1634_s4 + $0x8] sm:$0xff] }
  0xb4   : > { %902 = vmatpush.msra.mxu2 %v488_v11  ;;  %676 = vmatpush.msra.mxu0 %v487_v23  ;;  %v445_v56 = vld [vmem:[%s1632_s3 + $0x110] sm:$0xff]  ;;  %v443_v60 = vld [vmem:[%s1632_s3 + $0x100] sm:$0xff]  ;;  %v477_v63 = vmax.f32 %v413_v55, 0.0  ;;  %v475_v1 = vmax.f32 %v411_v59, 0.0  ;;  %v606_v4 = vld [vmem:[%s1634_s4 + $0x18] sm:$0xff] }
  0xb5   : > { %1015 = vmatpush.msra.mxu3 %v520_v12  ;;  %789 = vmatpush.msra.mxu1 %v519_v24  ;;  %v603_v61 = vld [vmem:[%s1634_s4] sm:$0xff]  ;;  %v509_v0 = vmax.f32 %v445_v56, 0.0  ;;  %v507_v2 = vmax.f32 %v443_v60, 0.0  ;;  %v605_v3 = vld [vmem:[%s1634_s4 + $0x10] sm:$0xff]  ;;  %v608_v6 = vld [vmem:[%s1634_s4 + $0x28] sm:$0xff] }
  0xb6   : > { %903 = vmatpush.msra.mxu2 %v486_v19  ;;  %677 = vmatpush.msra.mxu0 %v485_v31  ;;  %v607_v5 = vld [vmem:[%s1634_s4 + $0x20] sm:$0xff]  ;;  %v609_v7 = vld [vmem:[%s1634_s4 + $0x30] sm:$0xff]  ;;  %v610_v8 = vld [vmem:[%s1634_s4 + $0x38] sm:$0xff] }
  0xb7   : > { %1016 = vmatpush.msra.mxu3 %v518_v20  ;;  %790 = vmatpush.msra.mxu1 %v517_v32  ;;  %v611_v9 = vld [vmem:[%s1634_s4 + $0x40] sm:$0xff]  ;;  %v612_v10 = vld [vmem:[%s1634_s4 + $0x48] sm:$0xff]  ;;  %v613_v11 = vld [vmem:[%s1634_s4 + $0x50] sm:$0xff] }
  0xb8   : > { %904 = vmatpush.msra.mxu2 %v484_v27  ;;  %678 = vmatpush.msra.mxu0 %v483_v39  ;;  %v614_v12 = vld [vmem:[%s1634_s4 + $0x58] sm:$0xff]  ;;  %v615_v13 = vld [vmem:[%s1634_s4 + $0x60] sm:$0xff]  ;;  %v616_v14 = vld [vmem:[%s1634_s4 + $0x68] sm:$0xff] }
  0xb9   : > { %1017 = vmatpush.msra.mxu3 %v516_v28  ;;  %791 = vmatpush.msra.mxu1 %v515_v40  ;;  %v617_v15 = vld [vmem:[%s1634_s4 + $0x70] sm:$0xff]  ;;  %v618_v16 = vld [vmem:[%s1634_s4 + $0x78] sm:$0xff]  ;;  %v619_v17 = vld [vmem:[%s1634_s4 + $0x80] sm:$0xff] }
  0xba   : > { %905 = vmatpush.msra.mxu2 %v482_v35  ;;  %679 = vmatpush.msra.mxu0 %v481_v47  ;;  %v620_v18 = vld [vmem:[%s1634_s4 + $0x88] sm:$0xff]  ;;  %v621_v19 = vld [vmem:[%s1634_s4 + $0x90] sm:$0xff]  ;;  %v622_v20 = vld [vmem:[%s1634_s4 + $0x98] sm:$0xff] }
  0xbb   : > { %1018 = vmatpush.msra.mxu3 %v514_v36  ;;  %792 = vmatpush.msra.mxu1 %v513_v48  ;;  %v623_v21 = vld [vmem:[%s1634_s4 + $0xa0] sm:$0xff]  ;;  %v624_v22 = vld [vmem:[%s1634_s4 + $0xa8] sm:$0xff]  ;;  %v625_v23 = vld [vmem:[%s1634_s4 + $0xb0] sm:$0xff] }
  0xbc   : > { %906 = vmatpush.msra.mxu2 %v480_v43  ;;  %680 = vmatpush.msra.mxu0 %v479_v53  ;;  %v626_v24 = vld [vmem:[%s1634_s4 + $0xb8] sm:$0xff]  ;;  %v627_v25 = vld [vmem:[%s1634_s4 + $0xc0] sm:$0xff]  ;;  %v628_v26 = vld [vmem:[%s1634_s4 + $0xc8] sm:$0xff] }
  0xbd   : > { %1019 = vmatpush.msra.mxu3 %v512_v44  ;;  %793 = vmatpush.msra.mxu1 %v511_v54  ;;  %v629_v27 = vld [vmem:[%s1634_s4 + $0xd0] sm:$0xff]  ;;  %v630_v28 = vld [vmem:[%s1634_s4 + $0xd8] sm:$0xff]  ;;  %v631_v29 = vld [vmem:[%s1634_s4 + $0xe0] sm:$0xff] }
  0xbe   : > { %907 = vmatpush.msra.mxu2 %v478_v51  ;;  %681 = vmatpush.msra.mxu0 %v477_v63  ;;  %v632_v30 = vld [vmem:[%s1634_s4 + $0xe8] sm:$0xff]  ;;  %v633_v31 = vld [vmem:[%s1634_s4 + $0xf0] sm:$0xff]  ;;  %v634_v32 = vld [vmem:[%s1634_s4 + $0xf8] sm:$0xff] }
  0xbf   : > { %1020 = vmatpush.msra.mxu3 %v510_v52  ;;  %794 = vmatpush.msra.mxu1 %v509_v0  ;;  %v635_v33 = vld [vmem:[%s1634_s4 + $0x100] sm:$0xff]  ;;  %v636_v34 = vld [vmem:[%s1634_s4 + $0x108] sm:$0xff]  ;;  %v637_v44 = vld [vmem:[%s1634_s4 + $0x110] sm:$0xff] }
  0xc0   : > { %908 = vmatpush.msra.mxu2 %v476_v57  ;;  %682 = vmatpush.msra.mxu0 %v475_v1  ;;  %v539_v36 = vld [vmem:[%s2486_s2] sm:$0xff]  ;;  %v540_v40 = vld [vmem:[%s2486_s2 + $0x8] sm:$0xff]  ;;  %v638_v45 = vld [vmem:[%s1634_s4 + $0x118] sm:$0xff] }
  0xc1   : > { %1021 = vmatpush.msra.mxu3 %v508_v58  ;;  %909 = vmatmul.f32.vlgmr.msra.gmra.mxu2 %v603_v61  ;;  %v541_v48 = vld [vmem:[%s2486_s2 + $0x10] sm:$0xff]  ;;  %v542_v52 = vld [vmem:[%s2486_s2 + $0x18] sm:$0xff]  ;;  %v639_v56 = vld [vmem:[%s1634_s4 + $0x120] sm:$0xff] }
  0xc2   : > { %1022 = vmatmul.f32.vlgmr.msra.gmra.mxu3 %v604_v62  ;;  %795 = vmatpush.msra.mxu1 %v507_v2  ;;  %v640_v57 = vld [vmem:[%s1634_s4 + $0x128] sm:$0xff]  ;;  %v543_v60 = vld [vmem:[%s2486_s2 + $0x20] sm:$0xff] }
  0xc3   : > { %683 = vmatmul.f32.vlgmr.msra.gmra.mxu0 %v603_v61  ;;  %796 = vmatmul.f32.vlgmr.msra.gmra.mxu1 %v604_v62  ;;  %v544_v0 = vld [vmem:[%s2486_s2 + $0x28] sm:$0xff] }
  0xc9   : > { %912 = vmatmul.f32.gmra.mxu2 %v605_v3 }
  0xca   : > { %1025 = vmatmul.f32.gmra.mxu3 %v606_v4 }
  0xcb   : > { %686 = vmatmul.f32.gmra.mxu0 %v605_v3  ;;  %799 = vmatmul.f32.gmra.mxu1 %v606_v4  ;;  %v641_v4 = vld [vmem:[%s1634_s4 + $0x130] sm:$0xff] }
  0xd1   : > { %915 = vmatmul.f32.gmra.mxu2 %v607_v5 }
  0xd2   : > { %1028 = vmatmul.f32.gmra.mxu3 %v608_v6 }
  0xd3   : > { %689 = vmatmul.f32.gmra.mxu0 %v607_v5  ;;  %802 = vmatmul.f32.gmra.mxu1 %v608_v6  ;;  %v642_v5 = vld [vmem:[%s1634_s4 + $0x138] sm:$0xff] }
  0xd9   : > { %918 = vmatmul.f32.gmra.mxu2 %v609_v7 }
  0xda   : > { %1031 = vmatmul.f32.gmra.mxu3 %v610_v8 }
  0xdb   : > { %692 = vmatmul.f32.gmra.mxu0 %v609_v7  ;;  %805 = vmatmul.f32.gmra.mxu1 %v610_v8  ;;  %v545_v8 = vld [vmem:[%s2486_s2 + $0x30] sm:$0xff] }
  0xe1   : > { %921 = vmatmul.f32.gmra.mxu2 %v611_v9 }
  0xe2   : > { %1034 = vmatmul.f32.gmra.mxu3 %v612_v10 }
  0xe3   : > { %695 = vmatmul.f32.gmra.mxu0 %v611_v9  ;;  %808 = vmatmul.f32.gmra.mxu1 %v612_v10 }
  0xe9   : > { %924 = vmatmul.f32.gmra.mxu2 %v613_v11 }
  0xea   : > { %1037 = vmatmul.f32.gmra.mxu3 %v614_v12 }
  0xeb   : > { %698 = vmatmul.f32.gmra.mxu0 %v613_v11  ;;  %811 = vmatmul.f32.gmra.mxu1 %v614_v12  ;;  %v546_v12 = vld [vmem:[%s2486_s2 + $0x38] sm:$0xff] }
  0xf1   : > { %927 = vmatmul.f32.gmra.mxu2 %v615_v13 }
  0xf2   : > { %1040 = vmatmul.f32.gmra.mxu3 %v616_v14 }
  0xf3   : > { %701 = vmatmul.f32.gmra.mxu0 %v615_v13  ;;  %814 = vmatmul.f32.gmra.mxu1 %v616_v14 }
  0xf9   : > { %930 = vmatmul.f32.gmra.mxu2 %v617_v15 }
  0xfa   : > { %1043 = vmatmul.f32.gmra.mxu3 %v618_v16 }
  0xfb   : > { %704 = vmatmul.f32.gmra.mxu0 %v617_v15  ;;  %817 = vmatmul.f32.gmra.mxu1 %v618_v16  ;;  %v643_v16 = vld [vmem:[%s1634_s4 + $0x140] sm:$0xff] }
 0x101   : > { %933 = vmatmul.f32.gmra.mxu2 %v619_v17 }
 0x102   : > { %1046 = vmatmul.f32.gmra.mxu3 %v620_v18 }
 0x103   : > { %707 = vmatmul.f32.gmra.mxu0 %v619_v17  ;;  %820 = vmatmul.f32.gmra.mxu1 %v620_v18  ;;  %v644_v17 = vld [vmem:[%s1634_s4 + $0x148] sm:$0xff] }
 0x109   : > { %936 = vmatmul.f32.gmra.mxu2 %v621_v19 }
 0x10a   : > { %1049 = vmatmul.f32.gmra.mxu3 %v622_v20 }
 0x10b   : > { %710 = vmatmul.f32.gmra.mxu0 %v621_v19  ;;  %823 = vmatmul.f32.gmra.mxu1 %v622_v20  ;;  %v547_v20 = vld [vmem:[%s2486_s2 + $0x40] sm:$0xff] }
 0x111   : > { %939 = vmatmul.f32.gmra.mxu2 %v623_v21 }
 0x112   : > { %1052 = vmatmul.f32.gmra.mxu3 %v624_v22 }
 0x113   : > { %713 = vmatmul.f32.gmra.mxu0 %v623_v21  ;;  %826 = vmatmul.f32.gmra.mxu1 %v624_v22 }
 0x119   : > { %942 = vmatmul.f32.gmra.mxu2 %v625_v23 }
 0x11a   : > { %1055 = vmatmul.f32.gmra.mxu3 %v626_v24 }
 0x11b   : > { %716 = vmatmul.f32.gmra.mxu0 %v625_v23  ;;  %829 = vmatmul.f32.gmra.mxu1 %v626_v24  ;;  %v548_v24 = vld [vmem:[%s2486_s2 + $0x48] sm:$0xff] }
 0x121   : > { %945 = vmatmul.f32.gmra.mxu2 %v627_v25 }
 0x122   : > { %1058 = vmatmul.f32.gmra.mxu3 %v628_v26 }
 0x123   : > { %719 = vmatmul.f32.gmra.mxu0 %v627_v25  ;;  %832 = vmatmul.f32.gmra.mxu1 %v628_v26 }
 0x129   : > { %948 = vmatmul.f32.gmra.mxu2 %v629_v27 }
 0x12a   : > { %1061 = vmatmul.f32.gmra.mxu3 %v630_v28 }
 0x12b   : > { %722 = vmatmul.f32.gmra.mxu0 %v629_v27  ;;  %835 = vmatmul.f32.gmra.mxu1 %v630_v28  ;;  %v645_v28 = vld [vmem:[%s1634_s4 + $0x150] sm:$0xff] }
 0x131   : > { %951 = vmatmul.f32.gmra.mxu2 %v631_v29 }
 0x132   : > { %1064 = vmatmul.f32.gmra.mxu3 %v632_v30 }
 0x133   : > { %725 = vmatmul.f32.gmra.mxu0 %v631_v29  ;;  %838 = vmatmul.f32.gmra.mxu1 %v632_v30  ;;  %v646_v29 = vld [vmem:[%s1634_s4 + $0x158] sm:$0xff] }
 0x139   : > { %954 = vmatmul.f32.gmra.mxu2 %v633_v31 }
 0x13a   : > { %1067 = vmatmul.f32.gmra.mxu3 %v634_v32 }
 0x13b   : > { %728 = vmatmul.f32.gmra.mxu0 %v633_v31  ;;  %841 = vmatmul.f32.gmra.mxu1 %v634_v32  ;;  %v549_v32 = vld [vmem:[%s2486_s2 + $0x50] sm:$0xff] }
 0x140   : > { %v684_v35 = vpop.f32.mrf.mxu0  ;;  %v797_v37 = vpop.f32.mrf.mxu1 }
 0x141   : > { %957 = vmatmul.f32.gmra.mxu2 %v635_v33  ;;  %v798_v38 = vadd.f32 %v797_v37, %v684_v35 }
 0x142   : > { %1070 = vmatmul.f32.gmra.mxu3 %v636_v34 }
 0x143   : > { %v1119_v42 = vadd.f32 %v798_v38, %v539_v36  ;;  %731 = vmatmul.f32.gmra.mxu0 %v635_v33  ;;  %844 = vmatmul.f32.gmra.mxu1 %v636_v34  ;;  %v550_v36 = vld [vmem:[%s2486_s2 + $0x58] sm:$0xff] }
 0x144   : > { %v910_v39 = vpop.f32.mrf.mxu2 }
 0x145   : > { %v1023_v41 = vpop.f32.mrf.mxu3  ;;  %1183 = vst [vmem:[%s2486_s2] sm:$0xff] %v1119_v42 }
 0x146   : > { %v1024_v43 = vadd.f32 %v1023_v41, %v910_v39  ;;  %v648_v41 = vld [vmem:[%s1634_s4 + $0x168] sm:$0xff] }
 0x148   : > { %v1120_v46 = vadd.f32 %v1024_v43, %v540_v40  ;;  %v687_v47 = vpop.f32.mrf.mxu0  ;;  %v800_v49 = vpop.f32.mrf.mxu1  ;;  %v647_v40 = vld [vmem:[%s1634_s4 + $0x160] sm:$0xff] }
 0x149   : > { %960 = vmatmul.f32.gmra.mxu2 %v637_v44  ;;  %v801_v50 = vadd.f32 %v800_v49, %v687_v47 }
 0x14a   : > { %1185 = vst.msk [vmem:[%s2486_s2 + $0x8] sm:$0xff] %vm1184_vm1, %v1120_v46  ;;  %1073 = vmatmul.f32.gmra.mxu3 %v638_v45 }
 0x14b   : > { %v1121_v54 = vadd.f32 %v801_v50, %v541_v48  ;;  %734 = vmatmul.f32.gmra.mxu0 %v637_v44  ;;  %847 = vmatmul.f32.gmra.mxu1 %v638_v45  ;;  %v551_v44 = vld [vmem:[%s2486_s2 + $0x60] sm:$0xff]  ;;  %v552_v48 = vld [vmem:[%s2486_s2 + $0x68] sm:$0xff] }
 0x14c   : > { %v913_v51 = vpop.f32.mrf.mxu2 }
 0x14d   : > { %v1026_v53 = vpop.f32.mrf.mxu3  ;;  %1186 = vst [vmem:[%s2486_s2 + $0x10] sm:$0xff] %v1121_v54 }
 0x14e   : > { %v1027_v55 = vadd.f32 %v1026_v53, %v913_v51  ;;  %v650_v53 = vld [vmem:[%s1634_s4 + $0x178] sm:$0xff] }
 0x150   : > { %v1122_v58 = vadd.f32 %v1027_v55, %v542_v52  ;;  %v690_v59 = vpop.f32.mrf.mxu0  ;;  %v803_v61 = vpop.f32.mrf.mxu1  ;;  %v649_v52 = vld [vmem:[%s1634_s4 + $0x170] sm:$0xff] }
 0x151   : > { %963 = vmatmul.f32.gmra.mxu2 %v639_v56  ;;  %v804_v62 = vadd.f32 %v803_v61, %v690_v59 }
 0x152   : > { %1187 = vst.msk [vmem:[%s2486_s2 + $0x18] sm:$0xff] %vm1184_vm1, %v1122_v58  ;;  %1076 = vmatmul.f32.gmra.mxu3 %v640_v57 }
 0x153   : > { %v1123_v2 = vadd.f32 %v804_v62, %v543_v60  ;;  %737 = vmatmul.f32.gmra.mxu0 %v639_v56  ;;  %850 = vmatmul.f32.gmra.mxu1 %v640_v57  ;;  %v553_v56 = vld [vmem:[%s2486_s2 + $0x70] sm:$0xff]  ;;  %v554_v60 = vld [vmem:[%s2486_s2 + $0x78] sm:$0xff] }
 0x154   : > { %v916_v63 = vpop.f32.mrf.mxu2 }
 0x155   : > { %v1029_v1 = vpop.f32.mrf.mxu3  ;;  %1188 = vst [vmem:[%s2486_s2 + $0x20] sm:$0xff] %v1123_v2 }
 0x156   : > { %v1030_v3 = vadd.f32 %v1029_v1, %v916_v63  ;;  %v652_v1 = vld [vmem:[%s1634_s4 + $0x188] sm:$0xff] }
 0x158   : > { %v1124_v6 = vadd.f32 %v1030_v3, %v544_v0  ;;  %v693_v7 = vpop.f32.mrf.mxu0  ;;  %v806_v9 = vpop.f32.mrf.mxu1  ;;  %v651_v0 = vld [vmem:[%s1634_s4 + $0x180] sm:$0xff] }
 0x159   : > { %966 = vmatmul.f32.gmra.mxu2 %v641_v4  ;;  %v807_v10 = vadd.f32 %v806_v9, %v693_v7 }
 0x15a   : > { %1189 = vst.msk [vmem:[%s2486_s2 + $0x28] sm:$0xff] %vm1184_vm1, %v1124_v6  ;;  %1079 = vmatmul.f32.gmra.mxu3 %v642_v5 }
 0x15b   : > { %v1125_v14 = vadd.f32 %v807_v10, %v545_v8  ;;  %740 = vmatmul.f32.gmra.mxu0 %v641_v4  ;;  %853 = vmatmul.f32.gmra.mxu1 %v642_v5  ;;  %v555_v4 = vld [vmem:[%s2486_s2 + $0x80] sm:$0xff]  ;;  %v556_v8 = vld [vmem:[%s2486_s2 + $0x88] sm:$0xff] }
 0x15c   : > { %v919_v11 = vpop.f32.mrf.mxu2 }
 0x15d   : > { %v1032_v13 = vpop.f32.mrf.mxu3  ;;  %1190 = vst [vmem:[%s2486_s2 + $0x30] sm:$0xff] %v1125_v14 }
 0x15e   : > { %v1033_v15 = vadd.f32 %v1032_v13, %v919_v11  ;;  %v654_v13 = vld [vmem:[%s1634_s4 + $0x198] sm:$0xff] }
 0x160   : > { %v1126_v18 = vadd.f32 %v1033_v15, %v546_v12  ;;  %v696_v19 = vpop.f32.mrf.mxu0  ;;  %v809_v21 = vpop.f32.mrf.mxu1  ;;  %v653_v12 = vld [vmem:[%s1634_s4 + $0x190] sm:$0xff] }
 0x161   : > { %969 = vmatmul.f32.gmra.mxu2 %v643_v16  ;;  %v810_v22 = vadd.f32 %v809_v21, %v696_v19 }
 0x162   : > { %1191 = vst.msk [vmem:[%s2486_s2 + $0x38] sm:$0xff] %vm1184_vm1, %v1126_v18  ;;  %1082 = vmatmul.f32.gmra.mxu3 %v644_v17 }
 0x163   : > { %v1127_v26 = vadd.f32 %v810_v22, %v547_v20  ;;  %743 = vmatmul.f32.gmra.mxu0 %v643_v16  ;;  %856 = vmatmul.f32.gmra.mxu1 %v644_v17  ;;  %v557_v16 = vld [vmem:[%s2486_s2 + $0x90] sm:$0xff]  ;;  %v558_v20 = vld [vmem:[%s2486_s2 + $0x98] sm:$0xff] }
 0x164   : > { %v922_v23 = vpop.f32.mrf.mxu2 }
 0x165   : > { %v1035_v25 = vpop.f32.mrf.mxu3  ;;  %1192 = vst [vmem:[%s2486_s2 + $0x40] sm:$0xff] %v1127_v26 }
 0x166   : > { %v1036_v27 = vadd.f32 %v1035_v25, %v922_v23  ;;  %v656_v25 = vld [vmem:[%s1634_s4 + $0x1a8] sm:$0xff] }
 0x168   : > { %v1128_v30 = vadd.f32 %v1036_v27, %v548_v24  ;;  %v699_v31 = vpop.f32.mrf.mxu0  ;;  %v812_v33 = vpop.f32.mrf.mxu1  ;;  %v655_v24 = vld [vmem:[%s1634_s4 + $0x1a0] sm:$0xff] }
 0x169   : > { %972 = vmatmul.f32.gmra.mxu2 %v645_v28  ;;  %v813_v34 = vadd.f32 %v812_v33, %v699_v31 }
 0x16a   : > { %1193 = vst.msk [vmem:[%s2486_s2 + $0x48] sm:$0xff] %vm1184_vm1, %v1128_v30  ;;  %1085 = vmatmul.f32.gmra.mxu3 %v646_v29 }
 0x16b   : > { %v1129_v38 = vadd.f32 %v813_v34, %v549_v32  ;;  %746 = vmatmul.f32.gmra.mxu0 %v645_v28  ;;  %859 = vmatmul.f32.gmra.mxu1 %v646_v29  ;;  %v559_v28 = vld [vmem:[%s2486_s2 + $0xa0] sm:$0xff]  ;;  %v560_v32 = vld [vmem:[%s2486_s2 + $0xa8] sm:$0xff] }
 0x16c   : > { %v925_v35 = vpop.f32.mrf.mxu2 }
 0x16d   : > { %v1038_v37 = vpop.f32.mrf.mxu3  ;;  %1194 = vst [vmem:[%s2486_s2 + $0x50] sm:$0xff] %v1129_v38 }
 0x16e   : > { %v1039_v39 = vadd.f32 %v1038_v37, %v925_v35  ;;  %v658_v37 = vld [vmem:[%s1634_s4 + $0x1b8] sm:$0xff] }
 0x170   : > { %v1130_v42 = vadd.f32 %v1039_v39, %v550_v36  ;;  %v702_v43 = vpop.f32.mrf.mxu0  ;;  %v815_v45 = vpop.f32.mrf.mxu1  ;;  %v657_v36 = vld [vmem:[%s1634_s4 + $0x1b0] sm:$0xff] }
 0x171   : > { %975 = vmatmul.f32.gmra.mxu2 %v647_v40  ;;  %v816_v46 = vadd.f32 %v815_v45, %v702_v43 }
 0x172   : > { %1195 = vst.msk [vmem:[%s2486_s2 + $0x58] sm:$0xff] %vm1184_vm1, %v1130_v42  ;;  %1088 = vmatmul.f32.gmra.mxu3 %v648_v41 }
 0x173   : > { %v1131_v50 = vadd.f32 %v816_v46, %v551_v44  ;;  %749 = vmatmul.f32.gmra.mxu0 %v647_v40  ;;  %862 = vmatmul.f32.gmra.mxu1 %v648_v41  ;;  %v561_v40 = vld [vmem:[%s2486_s2 + $0xb0] sm:$0xff]  ;;  %v562_v44 = vld [vmem:[%s2486_s2 + $0xb8] sm:$0xff] }
 0x174   : > { %v928_v47 = vpop.f32.mrf.mxu2 }
 0x175   : > { %v1041_v49 = vpop.f32.mrf.mxu3  ;;  %1196 = vst [vmem:[%s2486_s2 + $0x60] sm:$0xff] %v1131_v50 }
 0x176   : > { %v1042_v51 = vadd.f32 %v1041_v49, %v928_v47  ;;  %v660_v49 = vld [vmem:[%s1634_s4 + $0x1c8] sm:$0xff] }
 0x178   : > { %v1132_v54 = vadd.f32 %v1042_v51, %v552_v48  ;;  %v705_v55 = vpop.f32.mrf.mxu0  ;;  %v818_v57 = vpop.f32.mrf.mxu1  ;;  %v659_v48 = vld [vmem:[%s1634_s4 + $0x1c0] sm:$0xff] }
 0x179   : > { %978 = vmatmul.f32.gmra.mxu2 %v649_v52  ;;  %v819_v58 = vadd.f32 %v818_v57, %v705_v55 }
 0x17a   : > { %1197 = vst.msk [vmem:[%s2486_s2 + $0x68] sm:$0xff] %vm1184_vm1, %v1132_v54  ;;  %1091 = vmatmul.f32.gmra.mxu3 %v650_v53 }
 0x17b   : > { %v1133_v62 = vadd.f32 %v819_v58, %v553_v56  ;;  %752 = vmatmul.f32.gmra.mxu0 %v649_v52  ;;  %865 = vmatmul.f32.gmra.mxu1 %v650_v53  ;;  %v563_v52 = vld [vmem:[%s2486_s2 + $0xc0] sm:$0xff]  ;;  %v564_v56 = vld [vmem:[%s2486_s2 + $0xc8] sm:$0xff] }
 0x17c   : > { %v931_v59 = vpop.f32.mrf.mxu2 }
 0x17d   : > { %v1044_v61 = vpop.f32.mrf.mxu3  ;;  %1198 = vst [vmem:[%s2486_s2 + $0x70] sm:$0xff] %v1133_v62 }
 0x17e   : > { %v1045_v63 = vadd.f32 %v1044_v61, %v931_v59  ;;  %v662_v61 = vld [vmem:[%s1634_s4 + $0x1d8] sm:$0xff] }
 0x180   : > { %v1134_v2 = vadd.f32 %v1045_v63, %v554_v60  ;;  %v708_v3 = vpop.f32.mrf.mxu0  ;;  %v821_v5 = vpop.f32.mrf.mxu1  ;;  %v661_v60 = vld [vmem:[%s1634_s4 + $0x1d0] sm:$0xff] }
 0x181   : > { %981 = vmatmul.f32.gmra.mxu2 %v651_v0  ;;  %v822_v6 = vadd.f32 %v821_v5, %v708_v3 }
 0x182   : > { %1199 = vst.msk [vmem:[%s2486_s2 + $0x78] sm:$0xff] %vm1184_vm1, %v1134_v2  ;;  %1094 = vmatmul.f32.gmra.mxu3 %v652_v1 }
 0x183   : > { %v1135_v10 = vadd.f32 %v822_v6, %v555_v4  ;;  %755 = vmatmul.f32.gmra.mxu0 %v651_v0  ;;  %868 = vmatmul.f32.gmra.mxu1 %v652_v1  ;;  %v565_v0 = vld [vmem:[%s2486_s2 + $0xd0] sm:$0xff]  ;;  %v566_v4 = vld [vmem:[%s2486_s2 + $0xd8] sm:$0xff] }
 0x184   : > { %v934_v7 = vpop.f32.mrf.mxu2 }
 0x185   : > { %v1047_v9 = vpop.f32.mrf.mxu3  ;;  %1200 = vst [vmem:[%s2486_s2 + $0x80] sm:$0xff] %v1135_v10 }
 0x186   : > { %v1048_v11 = vadd.f32 %v1047_v9, %v934_v7  ;;  %v664_v9 = vld [vmem:[%s1634_s4 + $0x1e8] sm:$0xff] }
 0x188   : > { %v1136_v14 = vadd.f32 %v1048_v11, %v556_v8  ;;  %v711_v15 = vpop.f32.mrf.mxu0  ;;  %v824_v17 = vpop.f32.mrf.mxu1  ;;  %v663_v8 = vld [vmem:[%s1634_s4 + $0x1e0] sm:$0xff] }
 0x189   : > { %984 = vmatmul.f32.gmra.mxu2 %v653_v12  ;;  %v825_v18 = vadd.f32 %v824_v17, %v711_v15 }
 0x18a   : > { %1201 = vst.msk [vmem:[%s2486_s2 + $0x88] sm:$0xff] %vm1184_vm1, %v1136_v14  ;;  %1097 = vmatmul.f32.gmra.mxu3 %v654_v13 }
 0x18b   : > { %v1137_v22 = vadd.f32 %v825_v18, %v557_v16  ;;  %758 = vmatmul.f32.gmra.mxu0 %v653_v12  ;;  %871 = vmatmul.f32.gmra.mxu1 %v654_v13  ;;  %v567_v12 = vld [vmem:[%s2486_s2 + $0xe0] sm:$0xff]  ;;  %v568_v16 = vld [vmem:[%s2486_s2 + $0xe8] sm:$0xff] }
 0x18c   : > { %v937_v19 = vpop.f32.mrf.mxu2 }
 0x18d   : > { %v1050_v21 = vpop.f32.mrf.mxu3  ;;  %1202 = vst [vmem:[%s2486_s2 + $0x90] sm:$0xff] %v1137_v22 }
 0x18e   : > { %v1051_v23 = vadd.f32 %v1050_v21, %v937_v19  ;;  %v666_v21 = vld [vmem:[%s1634_s4 + $0x1f8] sm:$0xff] }
 0x190   : > { %v1138_v26 = vadd.f32 %v1051_v23, %v558_v20  ;;  %v714_v27 = vpop.f32.mrf.mxu0  ;;  %v827_v29 = vpop.f32.mrf.mxu1  ;;  %v665_v20 = vld [vmem:[%s1634_s4 + $0x1f0] sm:$0xff] }
 0x191   : > { %987 = vmatmul.f32.gmra.mxu2 %v655_v24  ;;  %v828_v30 = vadd.f32 %v827_v29, %v714_v27 }
 0x192   : > { %1203 = vst.msk [vmem:[%s2486_s2 + $0x98] sm:$0xff] %vm1184_vm1, %v1138_v26  ;;  %1100 = vmatmul.f32.gmra.mxu3 %v656_v25 }
 0x193   : > { %v1139_v34 = vadd.f32 %v828_v30, %v559_v28  ;;  %761 = vmatmul.f32.gmra.mxu0 %v655_v24  ;;  %874 = vmatmul.f32.gmra.mxu1 %v656_v25  ;;  %v569_v24 = vld [vmem:[%s2486_s2 + $0xf0] sm:$0xff]  ;;  %v570_v28 = vld [vmem:[%s2486_s2 + $0xf8] sm:$0xff] }
 0x194   : > { %v940_v31 = vpop.f32.mrf.mxu2 }
 0x195   : > { %v1053_v33 = vpop.f32.mrf.mxu3  ;;  %1204 = vst [vmem:[%s2486_s2 + $0xa0] sm:$0xff] %v1139_v34  ;;  %v571_v34 = vld [vmem:[%s2486_s2 + $0x100] sm:$0xff] }
 0x196   : > { %v1054_v35 = vadd.f32 %v1053_v33, %v940_v31 }
 0x198   : > { %v1140_v38 = vadd.f32 %v1054_v35, %v560_v32  ;;  %v717_v39 = vpop.f32.mrf.mxu0  ;;  %v830_v41 = vpop.f32.mrf.mxu1 }
 0x199   : > { %990 = vmatmul.f32.gmra.mxu2 %v657_v36  ;;  %v831_v42 = vadd.f32 %v830_v41, %v717_v39 }
 0x19a   : > { %1205 = vst.msk [vmem:[%s2486_s2 + $0xa8] sm:$0xff] %vm1184_vm1, %v1140_v38  ;;  %1103 = vmatmul.f32.gmra.mxu3 %v658_v37  ;;  %v572_v38 = vld [vmem:[%s2486_s2 + $0x108] sm:$0xff] }
 0x19b   : > { %v1141_v46 = vadd.f32 %v831_v42, %v561_v40  ;;  %764 = vmatmul.f32.gmra.mxu0 %v657_v36  ;;  %877 = vmatmul.f32.gmra.mxu1 %v658_v37 }
 0x19c   : > { %v943_v43 = vpop.f32.mrf.mxu2 }
 0x19d   : > { %v1056_v45 = vpop.f32.mrf.mxu3  ;;  %1206 = vst [vmem:[%s2486_s2 + $0xb0] sm:$0xff] %v1141_v46 }
 0x19e   : > { %v1057_v47 = vadd.f32 %v1056_v45, %v943_v43 }
 0x1a0   : > { %v1142_v50 = vadd.f32 %v1057_v47, %v562_v44  ;;  %v720_v51 = vpop.f32.mrf.mxu0  ;;  %v833_v53 = vpop.f32.mrf.mxu1  ;;  %v573_v44 = vld [vmem:[%s2486_s2 + $0x110] sm:$0xff] }
 0x1a1   : > { %993 = vmatmul.f32.gmra.mxu2 %v659_v48  ;;  %v834_v54 = vadd.f32 %v833_v53, %v720_v51 }
 0x1a2   : > { %1207 = vst.msk [vmem:[%s2486_s2 + $0xb8] sm:$0xff] %vm1184_vm1, %v1142_v50  ;;  %1106 = vmatmul.f32.gmra.mxu3 %v660_v49 }
 0x1a3   : > { %v1143_v58 = vadd.f32 %v834_v54, %v563_v52  ;;  %767 = vmatmul.f32.gmra.mxu0 %v659_v48  ;;  %880 = vmatmul.f32.gmra.mxu1 %v660_v49  ;;  %v574_v48 = vld [vmem:[%s2486_s2 + $0x118] sm:$0xff]  ;;  %v575_v54 = vld [vmem:[%s2486_s2 + $0x120] sm:$0xff] }
 0x1a4   : > { %v946_v55 = vpop.f32.mrf.mxu2 }
 0x1a5   : > { %v1059_v57 = vpop.f32.mrf.mxu3  ;;  %1208 = vst [vmem:[%s2486_s2 + $0xc0] sm:$0xff] %v1143_v58  ;;  %v576_v58 = vld [vmem:[%s2486_s2 + $0x128] sm:$0xff] }
 0x1a6   : > { %v1060_v59 = vadd.f32 %v1059_v57, %v946_v55 }
 0x1a8   : > { %v1144_v62 = vadd.f32 %v1060_v59, %v564_v56  ;;  %v723_v63 = vpop.f32.mrf.mxu0  ;;  %v836_v1 = vpop.f32.mrf.mxu1 }
 0x1a9   : > { %996 = vmatmul.f32.gmra.mxu2 %v661_v60  ;;  %v837_v2 = vadd.f32 %v836_v1, %v723_v63 }
 0x1aa   : > { %1209 = vst.msk [vmem:[%s2486_s2 + $0xc8] sm:$0xff] %vm1184_vm1, %v1144_v62  ;;  %1109 = vmatmul.f32.gmra.mxu3 %v662_v61 }
 0x1ab   : > { %v1145_v6 = vadd.f32 %v837_v2, %v565_v0  ;;  %770 = vmatmul.f32.gmra.mxu0 %v661_v60  ;;  %883 = vmatmul.f32.gmra.mxu1 %v662_v61  ;;  %v577_v0 = vld [vmem:[%s2486_s2 + $0x130] sm:$0xff] }
 0x1ac   : > { %v949_v3 = vpop.f32.mrf.mxu2 }
 0x1ad   : > { %v1062_v5 = vpop.f32.mrf.mxu3  ;;  %1210 = vst [vmem:[%s2486_s2 + $0xd0] sm:$0xff] %v1145_v6 }
 0x1ae   : > { %v1063_v7 = vadd.f32 %v1062_v5, %v949_v3 }
 0x1b0   : > { %v1146_v10 = vadd.f32 %v1063_v7, %v566_v4  ;;  %v726_v11 = vpop.f32.mrf.mxu0  ;;  %v839_v13 = vpop.f32.mrf.mxu1  ;;  %v578_v4 = vld [vmem:[%s2486_s2 + $0x138] sm:$0xff] }
 0x1b1   : > { %999 = vmatmul.f32.gmra.mxu2 %v663_v8  ;;  %v840_v14 = vadd.f32 %v839_v13, %v726_v11 }
 0x1b2   : > { %1211 = vst.msk [vmem:[%s2486_s2 + $0xd8] sm:$0xff] %vm1184_vm1, %v1146_v10  ;;  %1112 = vmatmul.f32.gmra.mxu3 %v664_v9  ;;  %v579_v10 = vld [vmem:[%s2486_s2 + $0x140] sm:$0xff] }
 0x1b3   : > { %v1147_v18 = vadd.f32 %v840_v14, %v567_v12  ;;  %773 = vmatmul.f32.gmra.mxu0 %v663_v8  ;;  %886 = vmatmul.f32.gmra.mxu1 %v664_v9  ;;  %v580_v14 = vld [vmem:[%s2486_s2 + $0x148] sm:$0xff] }
 0x1b4   : > { %v952_v15 = vpop.f32.mrf.mxu2 }
 0x1b5   : > { %v1065_v17 = vpop.f32.mrf.mxu3  ;;  %1212 = vst [vmem:[%s2486_s2 + $0xe0] sm:$0xff] %v1147_v18 }
 0x1b6   : > { %v1066_v19 = vadd.f32 %v1065_v17, %v952_v15 }
 0x1b8   : > { %v1148_v22 = vadd.f32 %v1066_v19, %v568_v16  ;;  %v729_v23 = vpop.f32.mrf.mxu0  ;;  %v842_v25 = vpop.f32.mrf.mxu1 }
 0x1b9   : > { %1002 = vmatmul.f32.gmra.mxu2 %v665_v20  ;;  %v843_v26 = vadd.f32 %v842_v25, %v729_v23 }
 0x1ba   : > { %1213 = vst.msk [vmem:[%s2486_s2 + $0xe8] sm:$0xff] %vm1184_vm1, %v1148_v22  ;;  %1115 = vmatmul.f32.gmra.mxu3 %v666_v21 }
 0x1bb   : > { %v1149_v30 = vadd.f32 %v843_v26, %v569_v24  ;;  %776 = vmatmul.f32.gmra.mxu0 %v665_v20  ;;  %889 = vmatmul.f32.gmra.mxu1 %v666_v21  ;;  %v581_v20 = vld [vmem:[%s2486_s2 + $0x150] sm:$0xff]  ;;  %v582_v24 = vld [vmem:[%s2486_s2 + $0x158] sm:$0xff] }
 0x1bc   : > { %v955_v27 = vpop.f32.mrf.mxu2 }
 0x1bd   : > { %v1068_v29 = vpop.f32.mrf.mxu3  ;;  %1214 = vst [vmem:[%s2486_s2 + $0xf0] sm:$0xff] %v1149_v30  ;;  %v583_v30 = vld [vmem:[%s2486_s2 + $0x160] sm:$0xff] }
 0x1be   : > { %v1069_v31 = vadd.f32 %v1068_v29, %v955_v27 }
 0x1c0   : > { %v1150_v32 = vadd.f32 %v1069_v31, %v570_v28  ;;  %v732_v33 = vpop.f32.mrf.mxu0  ;;  %v845_v35 = vpop.f32.mrf.mxu1 }
 0x1c1   : > { %v846_v36 = vadd.f32 %v845_v35, %v732_v33 }
 0x1c2   : > { %1215 = vst.msk [vmem:[%s2486_s2 + $0xf8] sm:$0xff] %vm1184_vm1, %v1150_v32 }
 0x1c3   : > { %v1151_v40 = vadd.f32 %v846_v36, %v571_v34  ;;  %v584_v34 = vld [vmem:[%s2486_s2 + $0x168] sm:$0xff] }
 0x1c4   : > { %v958_v37 = vpop.f32.mrf.mxu2 }
 0x1c5   : > { %v1071_v39 = vpop.f32.mrf.mxu3  ;;  %1216 = vst [vmem:[%s2486_s2 + $0x100] sm:$0xff] %v1151_v40  ;;  %v585_v40 = vld [vmem:[%s2486_s2 + $0x170] sm:$0xff] }
 0x1c6   : > { %v1072_v41 = vadd.f32 %v1071_v39, %v958_v37 }
 0x1c8   : > { %v1152_v42 = vadd.f32 %v1072_v41, %v572_v38  ;;  %v735_v43 = vpop.f32.mrf.mxu0  ;;  %v848_v45 = vpop.f32.mrf.mxu1 }
 0x1c9   : > { %v849_v46 = vadd.f32 %v848_v45, %v735_v43 }
 0x1ca   : > { %1217 = vst.msk [vmem:[%s2486_s2 + $0x108] sm:$0xff] %vm1184_vm1, %v1152_v42 }
 0x1cb   : > { %v1153_v50 = vadd.f32 %v849_v46, %v573_v44  ;;  %v586_v44 = vld [vmem:[%s2486_s2 + $0x178] sm:$0xff] }
 0x1cc   : > { %v961_v47 = vpop.f32.mrf.mxu2 }
 0x1cd   : > { %v1074_v49 = vpop.f32.mrf.mxu3  ;;  %1218 = vst [vmem:[%s2486_s2 + $0x110] sm:$0xff] %v1153_v50  ;;  %v587_v50 = vld [vmem:[%s2486_s2 + $0x180] sm:$0xff] }
 0x1ce   : > { %v1075_v51 = vadd.f32 %v1074_v49, %v961_v47 }
 0x1d0   : > { %v1154_v52 = vadd.f32 %v1075_v51, %v574_v48  ;;  %v738_v53 = vpop.f32.mrf.mxu0  ;;  %v851_v55 = vpop.f32.mrf.mxu1 }
 0x1d1   : > { %v852_v56 = vadd.f32 %v851_v55, %v738_v53 }
 0x1d2   : > { %1219 = vst.msk [vmem:[%s2486_s2 + $0x118] sm:$0xff] %vm1184_vm1, %v1154_v52 }
 0x1d3   : > { %v1155_v60 = vadd.f32 %v852_v56, %v575_v54  ;;  %v588_v54 = vld [vmem:[%s2486_s2 + $0x188] sm:$0xff] }
 0x1d4   : > { %v964_v57 = vpop.f32.mrf.mxu2 }
 0x1d5   : > { %v1077_v59 = vpop.f32.mrf.mxu3  ;;  %1220 = vst [vmem:[%s2486_s2 + $0x120] sm:$0xff] %v1155_v60  ;;  %v589_v60 = vld [vmem:[%s2486_s2 + $0x190] sm:$0xff] }
 0x1d6   : > { %v1078_v61 = vadd.f32 %v1077_v59, %v964_v57 }
 0x1d8   : > { %v1156_v62 = vadd.f32 %v1078_v61, %v576_v58  ;;  %v741_v63 = vpop.f32.mrf.mxu0  ;;  %v854_v1 = vpop.f32.mrf.mxu1 }
 0x1d9   : > { %v855_v2 = vadd.f32 %v854_v1, %v741_v63 }
 0x1da   : > { %1221 = vst.msk [vmem:[%s2486_s2 + $0x128] sm:$0xff] %vm1184_vm1, %v1156_v62 }
 0x1db   : > { %v1157_v6 = vadd.f32 %v855_v2, %v577_v0  ;;  %v590_v0 = vld [vmem:[%s2486_s2 + $0x198] sm:$0xff] }
 0x1dc   : > { %v967_v3 = vpop.f32.mrf.mxu2 }
 0x1dd   : > { %v1080_v5 = vpop.f32.mrf.mxu3  ;;  %1222 = vst [vmem:[%s2486_s2 + $0x130] sm:$0xff] %v1157_v6  ;;  %v591_v6 = vld [vmem:[%s2486_s2 + $0x1a0] sm:$0xff] }
 0x1de   : > { %v1081_v7 = vadd.f32 %v1080_v5, %v967_v3 }
 0x1e0   : > { %v1158_v8 = vadd.f32 %v1081_v7, %v578_v4  ;;  %v744_v9 = vpop.f32.mrf.mxu0  ;;  %v857_v11 = vpop.f32.mrf.mxu1 }
 0x1e1   : > { %v858_v12 = vadd.f32 %v857_v11, %v744_v9 }
 0x1e2   : > { %1223 = vst.msk [vmem:[%s2486_s2 + $0x138] sm:$0xff] %vm1184_vm1, %v1158_v8 }
 0x1e3   : > { %v1159_v16 = vadd.f32 %v858_v12, %v579_v10  ;;  %v592_v10 = vld [vmem:[%s2486_s2 + $0x1a8] sm:$0xff] }
 0x1e4   : > { %v970_v13 = vpop.f32.mrf.mxu2 }
 0x1e5   : > { %v1083_v15 = vpop.f32.mrf.mxu3  ;;  %1224 = vst [vmem:[%s2486_s2 + $0x140] sm:$0xff] %v1159_v16  ;;  %v593_v16 = vld [vmem:[%s2486_s2 + $0x1b0] sm:$0xff] }
 0x1e6   : > { %v1084_v17 = vadd.f32 %v1083_v15, %v970_v13 }
 0x1e8   : > { %v1160_v18 = vadd.f32 %v1084_v17, %v580_v14  ;;  %v747_v19 = vpop.f32.mrf.mxu0  ;;  %v860_v21 = vpop.f32.mrf.mxu1 }
 0x1e9   : > { %v861_v22 = vadd.f32 %v860_v21, %v747_v19 }
 0x1ea   : > { %1225 = vst.msk [vmem:[%s2486_s2 + $0x148] sm:$0xff] %vm1184_vm1, %v1160_v18 }
 0x1eb   : > { %v1161_v26 = vadd.f32 %v861_v22, %v581_v20  ;;  %v594_v20 = vld [vmem:[%s2486_s2 + $0x1b8] sm:$0xff] }
 0x1ec   : > { %v973_v23 = vpop.f32.mrf.mxu2 }
 0x1ed   : > { %v1086_v25 = vpop.f32.mrf.mxu3  ;;  %1226 = vst [vmem:[%s2486_s2 + $0x150] sm:$0xff] %v1161_v26  ;;  %v595_v26 = vld [vmem:[%s2486_s2 + $0x1c0] sm:$0xff] }
 0x1ee   : > { %v1087_v27 = vadd.f32 %v1086_v25, %v973_v23 }
 0x1f0   : > { %v1162_v28 = vadd.f32 %v1087_v27, %v582_v24  ;;  %v750_v29 = vpop.f32.mrf.mxu0  ;;  %v863_v31 = vpop.f32.mrf.mxu1 }
 0x1f1   : > { %v864_v32 = vadd.f32 %v863_v31, %v750_v29 }
 0x1f2   : > { %1227 = vst.msk [vmem:[%s2486_s2 + $0x158] sm:$0xff] %vm1184_vm1, %v1162_v28 }
 0x1f3   : > { %v1163_v36 = vadd.f32 %v864_v32, %v583_v30  ;;  %v596_v30 = vld [vmem:[%s2486_s2 + $0x1c8] sm:$0xff] }
 0x1f4   : > { %v976_v33 = vpop.f32.mrf.mxu2 }
 0x1f5   : > { %v1089_v35 = vpop.f32.mrf.mxu3  ;;  %1228 = vst [vmem:[%s2486_s2 + $0x160] sm:$0xff] %v1163_v36  ;;  %v597_v36 = vld [vmem:[%s2486_s2 + $0x1d0] sm:$0xff] }
 0x1f6   : > { %v1090_v37 = vadd.f32 %v1089_v35, %v976_v33 }
 0x1f8   : > { %v1164_v38 = vadd.f32 %v1090_v37, %v584_v34  ;;  %v753_v39 = vpop.f32.mrf.mxu0  ;;  %v866_v41 = vpop.f32.mrf.mxu1 }
 0x1f9   : > { %v867_v42 = vadd.f32 %v866_v41, %v753_v39 }
 0x1fa   : > { %1229 = vst.msk [vmem:[%s2486_s2 + $0x168] sm:$0xff] %vm1184_vm1, %v1164_v38 }
 0x1fb   : > { %v1165_v46 = vadd.f32 %v867_v42, %v585_v40  ;;  %v598_v40 = vld [vmem:[%s2486_s2 + $0x1d8] sm:$0xff] }
 0x1fc   : > { %v979_v43 = vpop.f32.mrf.mxu2 }
 0x1fd   : > { %v1092_v45 = vpop.f32.mrf.mxu3  ;;  %1230 = vst [vmem:[%s2486_s2 + $0x170] sm:$0xff] %v1165_v46  ;;  %v599_v46 = vld [vmem:[%s2486_s2 + $0x1e0] sm:$0xff] }
 0x1fe   : > { %v1093_v47 = vadd.f32 %v1092_v45, %v979_v43 }
 0x200   : > { %v1166_v48 = vadd.f32 %v1093_v47, %v586_v44  ;;  %v756_v49 = vpop.f32.mrf.mxu0  ;;  %v869_v51 = vpop.f32.mrf.mxu1 }
 0x201   : > { %v870_v52 = vadd.f32 %v869_v51, %v756_v49 }
 0x202   : > { %1231 = vst.msk [vmem:[%s2486_s2 + $0x178] sm:$0xff] %vm1184_vm1, %v1166_v48 }
 0x203   : > { %v1167_v56 = vadd.f32 %v870_v52, %v587_v50  ;;  %v600_v50 = vld [vmem:[%s2486_s2 + $0x1e8] sm:$0xff] }
 0x204   : > { %v982_v53 = vpop.f32.mrf.mxu2 }
 0x205   : > { %v1095_v55 = vpop.f32.mrf.mxu3  ;;  %1232 = vst [vmem:[%s2486_s2 + $0x180] sm:$0xff] %v1167_v56  ;;  %v601_v56 = vld [vmem:[%s2486_s2 + $0x1f0] sm:$0xff] }
 0x206   : > { %v1096_v57 = vadd.f32 %v1095_v55, %v982_v53 }
 0x208   : > { %v1168_v58 = vadd.f32 %v1096_v57, %v588_v54  ;;  %v759_v59 = vpop.f32.mrf.mxu0  ;;  %v872_v61 = vpop.f32.mrf.mxu1 }
 0x209   : > { %v873_v62 = vadd.f32 %v872_v61, %v759_v59 }
 0x20a   : > { %1233 = vst.msk [vmem:[%s2486_s2 + $0x188] sm:$0xff] %vm1184_vm1, %v1168_v58 }
 0x20b   : > { %v1169_v2 = vadd.f32 %v873_v62, %v589_v60  ;;  %v602_v60 = vld [vmem:[%s2486_s2 + $0x1f8] sm:$0xff] }
 0x20c   : > { %v985_v63 = vpop.f32.mrf.mxu2 }
 0x20d   : > { %v1098_v1 = vpop.f32.mrf.mxu3  ;;  %1234 = vst [vmem:[%s2486_s2 + $0x190] sm:$0xff] %v1169_v2 }
 0x20e   : > { %v1099_v3 = vadd.f32 %v1098_v1, %v985_v63 }
 0x210   : > { %v1170_v4 = vadd.f32 %v1099_v3, %v590_v0  ;;  %v762_v5 = vpop.f32.mrf.mxu0  ;;  %v875_v7 = vpop.f32.mrf.mxu1 }
 0x211   : > { %v876_v8 = vadd.f32 %v875_v7, %v762_v5 }
 0x212   : > { %1235 = vst.msk [vmem:[%s2486_s2 + $0x198] sm:$0xff] %vm1184_vm1, %v1170_v4 }
 0x213   : > { %v1171_v12 = vadd.f32 %v876_v8, %v591_v6 }
 0x214   : > { %v988_v9 = vpop.f32.mrf.mxu2 }
 0x215   : > { %v1101_v11 = vpop.f32.mrf.mxu3  ;;  %1236 = vst [vmem:[%s2486_s2 + $0x1a0] sm:$0xff] %v1171_v12 }
 0x216   : > { %v1102_v13 = vadd.f32 %v1101_v11, %v988_v9 }
 0x218   : > { %v1172_v14 = vadd.f32 %v1102_v13, %v592_v10  ;;  %v765_v15 = vpop.f32.mrf.mxu0  ;;  %v878_v17 = vpop.f32.mrf.mxu1 }
 0x219   : > { %v879_v18 = vadd.f32 %v878_v17, %v765_v15 }
 0x21a   : > { %1237 = vst.msk [vmem:[%s2486_s2 + $0x1a8] sm:$0xff] %vm1184_vm1, %v1172_v14 }
 0x21b   : > { %v1173_v22 = vadd.f32 %v879_v18, %v593_v16 }
 0x21c   : > { %v991_v19 = vpop.f32.mrf.mxu2 }
 0x21d   : > { %v1104_v21 = vpop.f32.mrf.mxu3  ;;  %1238 = vst [vmem:[%s2486_s2 + $0x1b0] sm:$0xff] %v1173_v22 }
 0x21e   : > { %v1105_v23 = vadd.f32 %v1104_v21, %v991_v19 }
 0x220   : > { %v1174_v24 = vadd.f32 %v1105_v23, %v594_v20  ;;  %v768_v25 = vpop.f32.mrf.mxu0  ;;  %v881_v27 = vpop.f32.mrf.mxu1 }
 0x221   : > { %v882_v28 = vadd.f32 %v881_v27, %v768_v25 }
 0x222   : > { %1239 = vst.msk [vmem:[%s2486_s2 + $0x1b8] sm:$0xff] %vm1184_vm1, %v1174_v24 }
 0x223   : > { %v1175_v32 = vadd.f32 %v882_v28, %v595_v26 }
 0x224   : > { %v994_v29 = vpop.f32.mrf.mxu2 }
 0x225   : > { %v1107_v31 = vpop.f32.mrf.mxu3  ;;  %1240 = vst [vmem:[%s2486_s2 + $0x1c0] sm:$0xff] %v1175_v32 }
 0x226   : > { %v1108_v33 = vadd.f32 %v1107_v31, %v994_v29 }
 0x228   : > { %v1176_v34 = vadd.f32 %v1108_v33, %v596_v30  ;;  %v771_v35 = vpop.f32.mrf.mxu0  ;;  %v884_v37 = vpop.f32.mrf.mxu1 }
 0x229   : > { %v885_v38 = vadd.f32 %v884_v37, %v771_v35 }
 0x22a   : > { %1241 = vst.msk [vmem:[%s2486_s2 + $0x1c8] sm:$0xff] %vm1184_vm1, %v1176_v34 }
 0x22b   : > { %v1177_v42 = vadd.f32 %v885_v38, %v597_v36 }
 0x22c   : > { %v997_v39 = vpop.f32.mrf.mxu2 }
 0x22d   : > { %v1110_v41 = vpop.f32.mrf.mxu3  ;;  %1242 = vst [vmem:[%s2486_s2 + $0x1d0] sm:$0xff] %v1177_v42 }
 0x22e   : > { %v1111_v43 = vadd.f32 %v1110_v41, %v997_v39 }
 0x230   : > { %v1178_v44 = vadd.f32 %v1111_v43, %v598_v40  ;;  %v774_v45 = vpop.f32.mrf.mxu0  ;;  %v887_v47 = vpop.f32.mrf.mxu1 }
 0x231   : > { %v888_v48 = vadd.f32 %v887_v47, %v774_v45 }
 0x232   : > { %1243 = vst.msk [vmem:[%s2486_s2 + $0x1d8] sm:$0xff] %vm1184_vm1, %v1178_v44 }
 0x233   : > { %v1179_v52 = vadd.f32 %v888_v48, %v599_v46 }
 0x234   : > { %v1000_v49 = vpop.f32.mrf.mxu2 }
 0x235   : > { %v1113_v51 = vpop.f32.mrf.mxu3  ;;  %1244 = vst [vmem:[%s2486_s2 + $0x1e0] sm:$0xff] %v1179_v52 }
 0x236   : > { %v1114_v53 = vadd.f32 %v1113_v51, %v1000_v49 }
 0x238   : > { %v1180_v54 = vadd.f32 %v1114_v53, %v600_v50  ;;  %v777_v55 = vpop.f32.mrf.mxu0  ;;  %v890_v57 = vpop.f32.mrf.mxu1 }
 0x239   : > { %v891_v58 = vadd.f32 %v890_v57, %v777_v55 }
 0x23a   : > { %1245 = vst.msk [vmem:[%s2486_s2 + $0x1e8] sm:$0xff] %vm1184_vm1, %v1180_v54 }
 0x23b   : > { %v1181_v62 = vadd.f32 %v891_v58, %v601_v56 }
 0x23c   : > { %v1003_v59 = vpop.f32.mrf.mxu2 }
 0x23d   : > { %v1116_v61 = vpop.f32.mrf.mxu3  ;;  %1246 = vst [vmem:[%s2486_s2 + $0x1f0] sm:$0xff] %v1181_v62 }
 0x23e   : > { %v1117_v63 = vadd.f32 %v1116_v61, %v1003_v59 }
 0x240   : > { %v1182_v0 = vadd.f32 %v1117_v63, %v602_v60 }
 0x242   : > { %1247 = vst.msk [vmem:[%s2486_s2 + $0x1f8] sm:$0xff] %vm1184_vm1, %v1182_v0 }
 0x243 PF: > { %s12_s13 = sadd.s32 1, %s1432_s13   ;;  %s2487_s9 = smov %s1420_s10 }
 0x244   : > { %p9_p11 = scmp.ge.s32.totalorder %s12_s13, 6   ;;  %s2488_s10 = smov %s1485_s17 }
 0x245   : > { %s2489_s11 = smov %s1428_s12  ;;  %s2490_s12 = smov %s2492_s14 }
 0x246   :  { %11 = sbr.rel (!%p9_p11) target bundleno = 3 (0x3), region = 93 }

</bundles_post_ra>
